<compile_context>
chip_gen: v5e
topology: v5e:2x2
jax: 0.10.0
libtpu: 0.0.40
codegen_flags: <defaults>
</compile_context>

<pallas_src>
import functools
import inspect
import math

import jax
import jax.numpy as jnp
from jax import lax
from jax.experimental import pallas as pl
from jax.experimental.pallas import tpu as pltpu

_MIB = 1024 * 1024


def _layer_norm(x, gamma, beta, eps=1e-5):
    # x: (Tq, D) f32; gamma/beta: (1, D) f32
    mean = jnp.mean(x, axis=-1, keepdims=True)
    var = jnp.mean((x - mean) ** 2, axis=-1, keepdims=True)
    return (x - mean) * lax.rsqrt(var + eps) * gamma + beta


def encoder_layer_kernel(
    mask_ref, v_in_ref, k_in_ref, q_in_ref,
    wq_ref, bq_ref, wk_ref, bk_ref, wv_ref, bv_ref, wo_ref, bo_ref,
    ln1_g_ref, ln1_b_ref,
    w1_ref, b1_ref, w2_ref, b2_ref,
    ln2_g_ref, ln2_b_ref,
    out_ref,
    *, heads: int, head_dim: int,
):
    f32 = jnp.float32
    bf16 = jnp.bfloat16

    q_in = q_in_ref[0]                        # (Tq, D) bf16
    k_in = k_in_ref[0]                        # (S,  D) bf16
    v_in = v_in_ref[0]                        # (S,  D) bf16

    # Additive mask bias, hoisted out of the head loop.  mask block is either
    # (1, 1, S) (row mask, broadcast over query rows) or (1, Tq, S).
    # Fully-masked rows degenerate to a ~uniform distribution, matching the
    # masked_fill(-1e9) reference up to negligible differences.
    bias = jnp.where(mask_ref[0] == 0, -1e9, 0.0).astype(f32)

    scale = 1.0 / math.sqrt(head_dim)
    dims_qk = (((1,), (1,)), ((), ()))        # contract last dims, no transpose

    # NOTE: head_dim >= 128 is the MXU-efficient configuration on v6e/v7x
    # (per-head matmuls have K/N = head_dim); smaller head_dim underfills the
    # 256-wide MXU but remains correct.
    # TODO(synk): for heads >= 8 convert this static unroll into a
    # lax.fori_loop accumulating into a VMEM scratch to bound live ranges.
    acc = None
    for h in range(heads):                    # static unroll, heads is small
        qh = (jnp.dot(q_in, wq_ref[h], preferred_element_type=f32)
              + bq_ref[h]) * scale                                   # (Tq, Dh)
        kh = jnp.dot(k_in, wk_ref[h], preferred_element_type=f32) + bk_ref[h]
        vh = jnp.dot(v_in, wv_ref[h], preferred_element_type=f32) + bv_ref[h]

        s = lax.dot_general(qh.astype(bf16), kh.astype(bf16), dims_qk,
                            preferred_element_type=f32) + bias       # (Tq, S)
        s = s - jnp.max(s, axis=-1, keepdims=True)
        p = jnp.exp(s)
        # approx reciprocal: ~1e-3 relative error per row, fine for bf16 out.
        p = p * pl.reciprocal(jnp.sum(p, axis=-1, keepdims=True), approx=True)

        ctx = jnp.dot(p.astype(bf16), vh.astype(bf16),
                      preferred_element_type=f32)                    # (Tq, Dh)
        part = jnp.dot(ctx.astype(bf16), wo_ref[h],
                       preferred_element_type=f32)                   # (Tq, D)
        acc = part if acc is None else acc + part

    attn = acc + bo_ref[...]

    # --- Add & Norm 1 (residual is the query input), f32 statistics ---------
    x = _layer_norm(q_in.astype(f32) + attn, ln1_g_ref[...], ln1_b_ref[...])

    # --- Feed-forward network ------------------------------------------------
    # TODO(synk): dropout omitted — module is constructed with dropout=None.
    # TODO(synk): for very large D/D_ff on v7x (64 MiB VMEM), tile the FFN over
    # D_ff chunks (extra grid axis + accumulator) instead of resident W1/W2.
    h1 = (jnp.dot(x.astype(bf16), w1_ref[...], preferred_element_type=f32)
          + b1_ref[...])
    h1 = jnp.maximum(h1, 0.0).astype(bf16)
    ffn = jnp.dot(h1, w2_ref[...], preferred_element_type=f32) + b2_ref[...]

    # --- Add & Norm 2 ---------------------------------------------------------
    y = _layer_norm(x + ffn, ln2_g_ref[...], ln2_b_ref[...])
    out_ref[0] = y.astype(out_ref.dtype)


def _tpu_vmem_capacity_bytes() -> int:
    """Physical per-core VMEM; conservative (v7x-sized) if the query fails."""
    try:
        cap = getattr(pltpu.get_tpu_info(), "vmem_capacity_bytes", None)
        if cap:
            return int(cap)
    except Exception:
        pass
    return 64 * _MIB


def _vmem_limit_bytes(capacity: int) -> int:
    # Never hand the compiler the entire physical VMEM; leave headroom for
    # compiler-internal scratch.  v7x (64 MiB): ~52 MiB.  v5e/v6e (128): ~110.
    if capacity <= 64 * _MIB:
        return max(32 * _MIB, min(52 * _MIB, capacity - 12 * _MIB))
    return max(64 * _MIB, min(110 * _MIB, capacity - 18 * _MIB))


def _vmem_estimate_bytes(q_tile, S, D, D_ff, full_mask):
    weights = 2 * (4 * D * D + 2 * D * D_ff)      # bf16 slabs, single-buffered
    kv = 2 * 2 * S * D                            # bf16 K+V, single-buffered
    per_tile = q_tile * (
        2 * 2 * 2 * D        # q-in + out blocks, double-buffered, bf16
        + 4 * S              # one live f32 score tile
        + 6 * D_ff           # FFN intermediate (f32 + bf16 copies)
        + 16 * D             # f32 attn acc / residual / LN temporaries
    )
    if full_mask:
        per_tile += 2 * 2 * q_tile * S            # double-buffered bf16 mask
    return weights + kv + per_tile


def _pick_q_tile(S, D, D_ff, vmem_budget, full_mask, max_tile):
    # bf16 packs 16 rows per vreg -> never go below 16; prefer the largest
    # tile that fits the per-generation VMEM budget.
    cands = [t for t in (512, 256, 128, 64, 32, 16)
             if t <= max_tile and t <= S and S % t == 0]
    if not cands:
        return S                                  # short sequences: one tile
    for t in cands:
        if _vmem_estimate_bytes(t, S, D, D_ff, full_mask) <= vmem_budget:
            return t
    return cands[-1]


def _supports_single_buffering() -> bool:
    # Narrow capability check for pipeline_mode (replaces the old broad
    # try/except rebuild fallback).
    if not hasattr(pl, "Buffered"):
        return False
    try:
        return "pipeline_mode" in inspect.signature(pl.BlockSpec).parameters
    except (TypeError, ValueError):
        return True


def _split_qkv_w(w, heads):      # (D, H*Dh) -> (H, D, Dh)
    d_in, d_out = w.shape
    return jnp.transpose(w.reshape(d_in, heads, d_out // heads), (1, 0, 2))


def _split_qkv_b(b, heads):      # (1, H*Dh) -> (H, 1, Dh)
    d_out = b.shape[1]
    return jnp.transpose(b.reshape(1, heads, d_out // heads), (1, 0, 2))


def _split_out_w(w, heads):      # (H*Dh, D) -> (H, Dh, D)
    d_in, d_out = w.shape
    return w.reshape(heads, d_in // heads, d_out)


def encoder_layer(value, key, query, mask, params, *, heads: int):
    B, S, D = query.shape
    assert D % heads == 0
    head_dim = D // heads
    D_ff = params["w1"].shape[1]

    assert mask.ndim == 3 and mask.shape[-1] == S
    row_mask = mask.shape[1] == 1
    mask_batch = mask.shape[0]

    capacity = _tpu_vmem_capacity_bytes()
    vmem_limit = _vmem_limit_bytes(capacity)
    max_tile = 256 if capacity <= 64 * _MIB else 512

    q_tile = _pick_q_tile(S, D, D_ff, vmem_limit, not row_mask, max_tile)
    n_q = S // q_tile

    kernel = functools.partial(encoder_layer_kernel, heads=heads,
                               head_dim=head_dim)

    single_buffer = _supports_single_buffering()

    def const_spec(shape, heavy=False):
        zero = (0,) * len(shape)
        index_map = lambda b, qi: zero
        if heavy and single_buffer:
            return pl.BlockSpec(shape, index_map, pipeline_mode=pl.Buffered(1))
        return pl.BlockSpec(shape, index_map)

    # K/V block index only changes at batch boundaries -> single-buffer them
    # (one exposed DMA per batch, halves their VMEM footprint).
    # TODO(synk): for S/D where full (S, D) K/V no longer fits the budget
    # (v7x), add a KV grid axis with flash-style online softmax instead.
    kv_index = lambda b, qi: (b, 0, 0)
    if single_buffer:
        kv_spec = pl.BlockSpec((1, S, D), kv_index,
                               pipeline_mode=pl.Buffered(1))
    else:
        kv_spec = pl.BlockSpec((1, S, D), kv_index)

    q_spec = pl.BlockSpec((1, q_tile, D), lambda b, qi: (b, qi, 0))
    out_spec = pl.BlockSpec((1, q_tile, D), lambda b, qi: (b, qi, 0))
    if row_mask:
        mask_spec = pl.BlockSpec(
            (1, 1, S), lambda b, qi: (b if mask_batch > 1 else 0, 0, 0))
    else:
        mask_spec = pl.BlockSpec(
            (1, q_tile, S), lambda b, qi: (b if mask_batch > 1 else 0, qi, 0))

    in_specs = [
        mask_spec, kv_spec, kv_spec, q_spec,
        const_spec((heads, D, head_dim), heavy=True),    # Wq slabs
        const_spec((heads, 1, head_dim)),                # bq
        const_spec((heads, D, head_dim), heavy=True),    # Wk slabs
        const_spec((heads, 1, head_dim)),                # bk
        const_spec((heads, D, head_dim), heavy=True),    # Wv slabs
        const_spec((heads, 1, head_dim)),                # bv
        const_spec((heads, head_dim, D), heavy=True),    # Wo slabs
        const_spec((1, D)),                              # bo
        const_spec((1, D)), const_spec((1, D)),          # ln1 gamma, beta
        const_spec((D, D_ff), heavy=True), const_spec((1, D_ff)),   # W1, b1
        const_spec((D_ff, D), heavy=True), const_spec((1, D)),      # W2, b2
        const_spec((1, D)), const_spec((1, D)),          # ln2 gamma, beta
    ]

    call = pl.pallas_call(
        kernel,
        out_shape=jax.ShapeDtypeStruct((B, S, D), query.dtype),
        # grid = (B, n_q) with the q-tile axis innermost: constant-index weight
        # and K/V blocks are not re-fetched between steps (do not swap axes).
        grid=(B, n_q),
        in_specs=in_specs,
        out_specs=out_spec,
        compiler_params=pltpu.CompilerParams(
            dimension_semantics=("parallel", "parallel"),
            vmem_limit_bytes=vmem_limit,
        ),
    )

    # Wrapper-side layout plumbing only: per-head weight slabs so the kernel
    # never lane-slices projections or lane-concats per-head contexts.
    return call(
        mask, value, key, query,
        _split_qkv_w(params["wq"], heads), _split_qkv_b(params["bq"], heads),
        _split_qkv_w(params["wk"], heads), _split_qkv_b(params["bk"], heads),
        _split_qkv_w(params["wv"], heads), _split_qkv_b(params["bv"], heads),
        _split_out_w(params["wo"], heads), params["bo"],
        params["ln1_g"], params["ln1_b"],
        params["w1"], params["b1"], params["w2"], params["b2"],
        params["ln2_g"], params["ln2_b"],
    )


def init_params(key, d_model, forward_expansion=4, weight_dtype=jnp.bfloat16):
    d_ff = forward_expansion * d_model
    keys = jax.random.split(key, 6)

    def lin(k, fan_in, fan_out):
        bound = 1.0 / math.sqrt(fan_in)
        kw, kb = jax.random.split(k)
        w = jax.random.uniform(kw, (fan_in, fan_out), jnp.float32, -bound, bound)
        b = jax.random.uniform(kb, (1, fan_out), jnp.float32, -bound, bound)
        return w.astype(weight_dtype), b     # weights bf16 (MXU), biases f32

    wq, bq = lin(keys[0], d_model, d_model)
    wk, bk = lin(keys[1], d_model, d_model)
    wv, bv = lin(keys[2], d_model, d_model)
    wo, bo = lin(keys[3], d_model, d_model)
    w1, b1 = lin(keys[4], d_model, d_ff)
    w2, b2 = lin(keys[5], d_ff, d_model)
    return {
        "wq": wq, "bq": bq, "wk": wk, "bk": bk, "wv": wv, "bv": bv,
        "wo": wo, "bo": bo,
        "ln1_g": jnp.ones((1, d_model), jnp.float32),
        "ln1_b": jnp.zeros((1, d_model), jnp.float32),
        "w1": w1, "b1": b1, "w2": w2, "b2": b2,
        "ln2_g": jnp.ones((1, d_model), jnp.float32),
        "ln2_b": jnp.zeros((1, d_model), jnp.float32),
    }


def _reference(value, key, query, mask, params, heads):
    # Pure-JAX f32 reference using the same (bf16-rounded) weights.
    f32 = jnp.float32
    value, key, query, mask = (t.astype(f32) for t in (value, key, query, mask))
    p = {k: v.astype(f32) for k, v in params.items()}
    B, S, D = query.shape
    Dh = D // heads
    qp = query @ p["wq"] + p["bq"]
    kp = key @ p["wk"] + p["bk"]
    vp = value @ p["wv"] + p["bv"]

    def split(x):
        return x.reshape(B, S, heads, Dh).transpose(0, 2, 1, 3)

    qh, kh, vh = split(qp), split(kp), split(vp)
    scores = jnp.einsum("bhqd,bhkd->bhqk", qh, kh) / math.sqrt(Dh)
    scores = jnp.where(mask[:, None, :, :] == 0.0, -1e9, scores)
    pr = jax.nn.softmax(scores, axis=-1)
    ctx = jnp.einsum("bhqk,bhkd->bhqd", pr, vh).transpose(0, 2, 1, 3).reshape(B, S, D)
    attn = ctx @ p["wo"] + p["bo"]

    def ln(x, g, b):
        m = x.mean(-1, keepdims=True)
        v = ((x - m) ** 2).mean(-1, keepdims=True)
        return (x - m) * lax.rsqrt(v + 1e-5) * g + b

    x = ln(query + attn, p["ln1_g"], p["ln1_b"])
    ffn = jnp.maximum(x @ p["w1"] + p["b1"], 0.0) @ p["w2"] + p["b2"]
    return ln(x + ffn, p["ln2_g"], p["ln2_b"])


if __name__ == "__main__":
    B, S, D, H = 2, 8, 32, 4
    rng = jax.random.PRNGKey(0)
    k_v, k_k, k_q, k_p = jax.random.split(rng, 4)

    value = jax.random.normal(k_v, (B, S, D), jnp.float32).astype(jnp.bfloat16)
    key_t = jax.random.normal(k_k, (B, S, D), jnp.float32).astype(jnp.bfloat16)
    query = jax.random.normal(k_q, (B, S, D), jnp.float32).astype(jnp.bfloat16)
    # Key-padding mask as a (B, 1, S) row mask (no O(S^2) mask stream): the
    # last key position of batch 1 is masked out.
    mask = jnp.ones((B, 1, S), jnp.bfloat16).at[1, 0, -1].set(0)

    params = init_params(k_p, D)

    out = encoder_layer(value, key_t, query, mask, params, heads=H)
    out = jax.block_until_ready(out)

    ref = _reference(value, key_t, query, mask, params, H)
    assert out.shape == (B, S, D)
    assert out.dtype == query.dtype
    err = jnp.max(jnp.abs(out.astype(jnp.float32) - ref))
    assert err < 5e-2, f"mismatch vs reference: max abs err = {err}"

    print("KERNEL_OK")
</pallas_src>

<mosaic_0001>
module attributes {stable_mosaic.version = 11 : i64} {
  func.func @encoder_layer_kernel(%arg0: i32, %arg1: i32, %arg2: memref<1x1x8xbf16, #tpu.memory_space<vmem>>, %arg3: memref<1x8x32xbf16, #tpu.memory_space<vmem>>, %arg4: memref<1x8x32xbf16, #tpu.memory_space<vmem>>, %arg5: memref<1x8x32xbf16, #tpu.memory_space<vmem>>, %arg6: memref<4x32x8xbf16, #tpu.memory_space<vmem>>, %arg7: memref<4x1x8xf32, #tpu.memory_space<vmem>>, %arg8: memref<4x32x8xbf16, #tpu.memory_space<vmem>>, %arg9: memref<4x1x8xf32, #tpu.memory_space<vmem>>, %arg10: memref<4x32x8xbf16, #tpu.memory_space<vmem>>, %arg11: memref<4x1x8xf32, #tpu.memory_space<vmem>>, %arg12: memref<4x8x32xbf16, #tpu.memory_space<vmem>>, %arg13: memref<1x32xf32, #tpu.memory_space<vmem>>, %arg14: memref<1x32xf32, #tpu.memory_space<vmem>>, %arg15: memref<1x32xf32, #tpu.memory_space<vmem>>, %arg16: memref<32x128xbf16, #tpu.memory_space<vmem>>, %arg17: memref<1x128xf32, #tpu.memory_space<vmem>>, %arg18: memref<128x32xbf16, #tpu.memory_space<vmem>>, %arg19: memref<1x32xf32, #tpu.memory_space<vmem>>, %arg20: memref<1x32xf32, #tpu.memory_space<vmem>>, %arg21: memref<1x32xf32, #tpu.memory_space<vmem>>, %arg22: memref<1x8x32xbf16, #tpu.memory_space<vmem>>) attributes {dimension_semantics = [#tpu.dimension_semantics<parallel>, #tpu.dimension_semantics<parallel>], iteration_bounds = array<i64: 2, 1>, scalar_prefetch = 0 : i64, scratch_operands = 0 : i64, tpu.core_type = #tpu.core_type<tc>, window_params = [{transform_indices = @transform_0, window_bounds = array<i64: 1, 1, 8>}, {pipeline_mode = #tpu.pipeline_mode<synchronous>, transform_indices = @transform_1, window_bounds = array<i64: 1, 8, 32>}, {pipeline_mode = #tpu.pipeline_mode<synchronous>, transform_indices = @transform_2, window_bounds = array<i64: 1, 8, 32>}, {transform_indices = @transform_3, window_bounds = array<i64: 1, 8, 32>}, {pipeline_mode = #tpu.pipeline_mode<synchronous>, transform_indices = @transform_4, window_bounds = array<i64: 4, 32, 8>}, {pipeline_mode = #tpu.pipeline_mode<synchronous>, transform_indices = @transform_5, window_bounds = array<i64: 4, 1, 8>}, {pipeline_mode = #tpu.pipeline_mode<synchronous>, transform_indices = @transform_6, window_bounds = array<i64: 4, 32, 8>}, {pipeline_mode = #tpu.pipeline_mode<synchronous>, transform_indices = @transform_7, window_bounds = array<i64: 4, 1, 8>}, {pipeline_mode = #tpu.pipeline_mode<synchronous>, transform_indices = @transform_8, window_bounds = array<i64: 4, 32, 8>}, {pipeline_mode = #tpu.pipeline_mode<synchronous>, transform_indices = @transform_9, window_bounds = array<i64: 4, 1, 8>}, {pipeline_mode = #tpu.pipeline_mode<synchronous>, transform_indices = @transform_10, window_bounds = array<i64: 4, 8, 32>}, {pipeline_mode = #tpu.pipeline_mode<synchronous>, transform_indices = @transform_11, window_bounds = array<i64: 1, 32>}, {pipeline_mode = #tpu.pipeline_mode<synchronous>, transform_indices = @transform_12, window_bounds = array<i64: 1, 32>}, {pipeline_mode = #tpu.pipeline_mode<synchronous>, transform_indices = @transform_13, window_bounds = array<i64: 1, 32>}, {pipeline_mode = #tpu.pipeline_mode<synchronous>, transform_indices = @transform_14, window_bounds = array<i64: 32, 128>}, {pipeline_mode = #tpu.pipeline_mode<synchronous>, transform_indices = @transform_15, window_bounds = array<i64: 1, 128>}, {pipeline_mode = #tpu.pipeline_mode<synchronous>, transform_indices = @transform_16, window_bounds = array<i64: 128, 32>}, {pipeline_mode = #tpu.pipeline_mode<synchronous>, transform_indices = @transform_17, window_bounds = array<i64: 1, 32>}, {pipeline_mode = #tpu.pipeline_mode<synchronous>, transform_indices = @transform_18, window_bounds = array<i64: 1, 32>}, {pipeline_mode = #tpu.pipeline_mode<synchronous>, transform_indices = @transform_19, window_bounds = array<i64: 1, 32>}, {transform_indices = @transform_20, window_bounds = array<i64: 1, 8, 32>}]} {
    %c0 = arith.constant 0 : index
    %c0_0 = arith.constant 0 : index
    %c0_1 = arith.constant 0 : index
    %0 = vector.load %arg5[%c0, %c0_0, %c0_1] : memref<1x8x32xbf16, #tpu.memory_space<vmem>>, vector<1x8x32xbf16>
    %1 = vector.shape_cast %0 : vector<1x8x32xbf16> to vector<8x32xbf16>
    %c0_2 = arith.constant 0 : index
    %c0_3 = arith.constant 0 : index
    %c0_4 = arith.constant 0 : index
    %2 = vector.load %arg4[%c0_2, %c0_3, %c0_4] : memref<1x8x32xbf16, #tpu.memory_space<vmem>>, vector<1x8x32xbf16>
    %3 = vector.shape_cast %2 : vector<1x8x32xbf16> to vector<8x32xbf16>
    %c0_5 = arith.constant 0 : index
    %c0_6 = arith.constant 0 : index
    %c0_7 = arith.constant 0 : index
    %4 = vector.load %arg3[%c0_5, %c0_6, %c0_7] : memref<1x8x32xbf16, #tpu.memory_space<vmem>>, vector<1x8x32xbf16>
    %5 = vector.shape_cast %4 : vector<1x8x32xbf16> to vector<8x32xbf16>
    %c0_8 = arith.constant 0 : index
    %c0_9 = arith.constant 0 : index
    %c0_10 = arith.constant 0 : index
    %6 = vector.load %arg2[%c0_8, %c0_9, %c0_10] : memref<1x1x8xbf16, #tpu.memory_space<vmem>>, vector<1x1x8xbf16>
    %7 = vector.shape_cast %6 : vector<1x1x8xbf16> to vector<1x8xbf16>
    %cst = arith.constant 0.000000e+00 : bf16
    %8 = vector.broadcast %cst : bf16 to vector<1x8xbf16>
    %9 = arith.cmpf oeq, %7, %8 : vector<1x8xbf16>
    %cst_11 = arith.constant -1.000000e+09 : f32
    %cst_12 = arith.constant 0.000000e+00 : f32
    %10 = vector.broadcast %cst_11 : f32 to vector<1x8xf32>
    %11 = vector.broadcast %cst_12 : f32 to vector<1x8xf32>
    %12 = arith.select %9, %10, %11 : vector<1x8xi1>, vector<1x8xf32>
    %c0_13 = arith.constant 0 : index
    %c0_14 = arith.constant 0 : index
    %c0_15 = arith.constant 0 : index
    %13 = vector.load %arg6[%c0_13, %c0_14, %c0_15] : memref<4x32x8xbf16, #tpu.memory_space<vmem>>, vector<1x32x8xbf16>
    %14 = vector.shape_cast %13 : vector<1x32x8xbf16> to vector<32x8xbf16>
    %cst_16 = arith.constant dense<0.000000e+00> : vector<8x8xf32>
    %15 = tpu.matmul %1, %14, %cst_16 {dimension_numbers = #tpu.dot_dimension_numbers<[1], [0], [0], [1], [0, 0, 1, 1], [], []>} : vector<8x32xbf16>, vector<32x8xbf16>, vector<8x8xf32> -> vector<8x8xf32>
    %c0_17 = arith.constant 0 : index
    %c0_18 = arith.constant 0 : index
    %c0_19 = arith.constant 0 : index
    %16 = vector.load %arg7[%c0_17, %c0_18, %c0_19] : memref<4x1x8xf32, #tpu.memory_space<vmem>>, vector<1x1x8xf32>
    %17 = vector.shape_cast %16 : vector<1x1x8xf32> to vector<1x8xf32>
    %18 = vector.broadcast %17 : vector<1x8xf32> to vector<8x8xf32>
    %19 = arith.addf %15, %18 : vector<8x8xf32>
    %cst_20 = arith.constant 0.353553385 : f32
    %20 = vector.broadcast %cst_20 : f32 to vector<8x8xf32>
    %21 = arith.mulf %19, %20 : vector<8x8xf32>
    %c0_21 = arith.constant 0 : index
    %c0_22 = arith.constant 0 : index
    %c0_23 = arith.constant 0 : index
    %22 = vector.load %arg8[%c0_21, %c0_22, %c0_23] : memref<4x32x8xbf16, #tpu.memory_space<vmem>>, vector<1x32x8xbf16>
    %23 = vector.shape_cast %22 : vector<1x32x8xbf16> to vector<32x8xbf16>
    %cst_24 = arith.constant dense<0.000000e+00> : vector<8x8xf32>
    %24 = tpu.matmul %3, %23, %cst_24 {dimension_numbers = #tpu.dot_dimension_numbers<[1], [0], [0], [1], [0, 0, 1, 1], [], []>} : vector<8x32xbf16>, vector<32x8xbf16>, vector<8x8xf32> -> vector<8x8xf32>
    %c0_25 = arith.constant 0 : index
    %c0_26 = arith.constant 0 : index
    %c0_27 = arith.constant 0 : index
    %25 = vector.load %arg9[%c0_25, %c0_26, %c0_27] : memref<4x1x8xf32, #tpu.memory_space<vmem>>, vector<1x1x8xf32>
    %26 = vector.shape_cast %25 : vector<1x1x8xf32> to vector<1x8xf32>
    %27 = vector.broadcast %26 : vector<1x8xf32> to vector<8x8xf32>
    %28 = arith.addf %24, %27 : vector<8x8xf32>
    %c0_28 = arith.constant 0 : index
    %c0_29 = arith.constant 0 : index
    %c0_30 = arith.constant 0 : index
    %29 = vector.load %arg10[%c0_28, %c0_29, %c0_30] : memref<4x32x8xbf16, #tpu.memory_space<vmem>>, vector<1x32x8xbf16>
    %30 = vector.shape_cast %29 : vector<1x32x8xbf16> to vector<32x8xbf16>
    %cst_31 = arith.constant dense<0.000000e+00> : vector<8x8xf32>
    %31 = tpu.matmul %5, %30, %cst_31 {dimension_numbers = #tpu.dot_dimension_numbers<[1], [0], [0], [1], [0, 0, 1, 1], [], []>} : vector<8x32xbf16>, vector<32x8xbf16>, vector<8x8xf32> -> vector<8x8xf32>
    %c0_32 = arith.constant 0 : index
    %c0_33 = arith.constant 0 : index
    %c0_34 = arith.constant 0 : index
    %32 = vector.load %arg11[%c0_32, %c0_33, %c0_34] : memref<4x1x8xf32, #tpu.memory_space<vmem>>, vector<1x1x8xf32>
    %33 = vector.shape_cast %32 : vector<1x1x8xf32> to vector<1x8xf32>
    %34 = vector.broadcast %33 : vector<1x8xf32> to vector<8x8xf32>
    %35 = arith.addf %31, %34 : vector<8x8xf32>
    %36 = arith.truncf %21 : vector<8x8xf32> to vector<8x8xbf16>
    %37 = arith.truncf %28 : vector<8x8xf32> to vector<8x8xbf16>
    %cst_35 = arith.constant dense<0.000000e+00> : vector<8x8xf32>
    %38 = tpu.matmul %36, %37, %cst_35 {dimension_numbers = #tpu.dot_dimension_numbers<[1], [1], [0], [0], [0, 0, 1, 0], [], []>} : vector<8x8xbf16>, vector<8x8xbf16>, vector<8x8xf32> -> vector<8x8xf32>
    %39 = vector.broadcast %12 : vector<1x8xf32> to vector<8x8xf32>
    %40 = arith.addf %38, %39 : vector<8x8xf32>
    %cst_36 = arith.constant dense<0xFF800000> : vector<8xf32>
    %41 = vector.multi_reduction <maximumf>, %40, %cst_36 [1] : vector<8x8xf32> to vector<8xf32>
    %42 = vector.shape_cast %41 : vector<8xf32> to vector<8x1xf32>
    %43 = vector.broadcast %42 : vector<8x1xf32> to vector<8x8xf32>
    %44 = arith.subf %40, %43 : vector<8x8xf32>
    %45 = math.exp %44 : vector<8x8xf32>
    %cst_37 = arith.constant dense<0.000000e+00> : vector<8xf32>
    %46 = vector.multi_reduction <add>, %45, %cst_37 [1] : vector<8x8xf32> to vector<8xf32>
    %47 = vector.shape_cast %46 : vector<8xf32> to vector<8x1xf32>
    %48 = tpu.reciprocal %47 {approx = true} : vector<8x1xf32> -> vector<8x1xf32>
    %49 = vector.broadcast %48 : vector<8x1xf32> to vector<8x8xf32>
    %50 = arith.mulf %45, %49 : vector<8x8xf32>
    %51 = arith.truncf %50 : vector<8x8xf32> to vector<8x8xbf16>
    %52 = arith.truncf %35 : vector<8x8xf32> to vector<8x8xbf16>
    %cst_38 = arith.constant dense<0.000000e+00> : vector<8x8xf32>
    %53 = tpu.matmul %51, %52, %cst_38 {dimension_numbers = #tpu.dot_dimension_numbers<[1], [0], [0], [1], [0, 0, 1, 1], [], []>} : vector<8x8xbf16>, vector<8x8xbf16>, vector<8x8xf32> -> vector<8x8xf32>
    %54 = arith.truncf %53 : vector<8x8xf32> to vector<8x8xbf16>
    %c0_39 = arith.constant 0 : index
    %c0_40 = arith.constant 0 : index
    %c0_41 = arith.constant 0 : index
    %55 = vector.load %arg12[%c0_39, %c0_40, %c0_41] : memref<4x8x32xbf16, #tpu.memory_space<vmem>>, vector<1x8x32xbf16>
    %56 = vector.shape_cast %55 : vector<1x8x32xbf16> to vector<8x32xbf16>
    %cst_42 = arith.constant dense<0.000000e+00> : vector<8x32xf32>
    %57 = tpu.matmul %54, %56, %cst_42 {dimension_numbers = #tpu.dot_dimension_numbers<[1], [0], [0], [1], [0, 0, 1, 1], [], []>} : vector<8x8xbf16>, vector<8x32xbf16>, vector<8x32xf32> -> vector<8x32xf32>
    %c1 = arith.constant 1 : index
    %c0_43 = arith.constant 0 : index
    %c0_44 = arith.constant 0 : index
    %58 = vector.load %arg6[%c1, %c0_43, %c0_44] : memref<4x32x8xbf16, #tpu.memory_space<vmem>>, vector<1x32x8xbf16>
    %59 = vector.shape_cast %58 : vector<1x32x8xbf16> to vector<32x8xbf16>
    %cst_45 = arith.constant dense<0.000000e+00> : vector<8x8xf32>
    %60 = tpu.matmul %1, %59, %cst_45 {dimension_numbers = #tpu.dot_dimension_numbers<[1], [0], [0], [1], [0, 0, 1, 1], [], []>} : vector<8x32xbf16>, vector<32x8xbf16>, vector<8x8xf32> -> vector<8x8xf32>
    %c1_46 = arith.constant 1 : index
    %c0_47 = arith.constant 0 : index
    %c0_48 = arith.constant 0 : index
    %61 = vector.load %arg7[%c1_46, %c0_47, %c0_48] : memref<4x1x8xf32, #tpu.memory_space<vmem>>, vector<1x1x8xf32>
    %62 = vector.shape_cast %61 : vector<1x1x8xf32> to vector<1x8xf32>
    %63 = vector.broadcast %62 : vector<1x8xf32> to vector<8x8xf32>
    %64 = arith.addf %60, %63 : vector<8x8xf32>
    %cst_49 = arith.constant 0.353553385 : f32
    %65 = vector.broadcast %cst_49 : f32 to vector<8x8xf32>
    %66 = arith.mulf %64, %65 : vector<8x8xf32>
    %c1_50 = arith.constant 1 : index
    %c0_51 = arith.constant 0 : index
    %c0_52 = arith.constant 0 : index
    %67 = vector.load %arg8[%c1_50, %c0_51, %c0_52] : memref<4x32x8xbf16, #tpu.memory_space<vmem>>, vector<1x32x8xbf16>
    %68 = vector.shape_cast %67 : vector<1x32x8xbf16> to vector<32x8xbf16>
    %cst_53 = arith.constant dense<0.000000e+00> : vector<8x8xf32>
    %69 = tpu.matmul %3, %68, %cst_53 {dimension_numbers = #tpu.dot_dimension_numbers<[1], [0], [0], [1], [0, 0, 1, 1], [], []>} : vector<8x32xbf16>, vector<32x8xbf16>, vector<8x8xf32> -> vector<8x8xf32>
    %c1_54 = arith.constant 1 : index
    %c0_55 = arith.constant 0 : index
    %c0_56 = arith.constant 0 : index
    %70 = vector.load %arg9[%c1_54, %c0_55, %c0_56] : memref<4x1x8xf32, #tpu.memory_space<vmem>>, vector<1x1x8xf32>
    %71 = vector.shape_cast %70 : vector<1x1x8xf32> to vector<1x8xf32>
    %72 = vector.broadcast %71 : vector<1x8xf32> to vector<8x8xf32>
    %73 = arith.addf %69, %72 : vector<8x8xf32>
    %c1_57 = arith.constant 1 : index
    %c0_58 = arith.constant 0 : index
    %c0_59 = arith.constant 0 : index
    %74 = vector.load %arg10[%c1_57, %c0_58, %c0_59] : memref<4x32x8xbf16, #tpu.memory_space<vmem>>, vector<1x32x8xbf16>
    %75 = vector.shape_cast %74 : vector<1x32x8xbf16> to vector<32x8xbf16>
    %cst_60 = arith.constant dense<0.000000e+00> : vector<8x8xf32>
    %76 = tpu.matmul %5, %75, %cst_60 {dimension_numbers = #tpu.dot_dimension_numbers<[1], [0], [0], [1], [0, 0, 1, 1], [], []>} : vector<8x32xbf16>, vector<32x8xbf16>, vector<8x8xf32> -> vector<8x8xf32>
    %c1_61 = arith.constant 1 : index
    %c0_62 = arith.constant 0 : index
    %c0_63 = arith.constant 0 : index
    %77 = vector.load %arg11[%c1_61, %c0_62, %c0_63] : memref<4x1x8xf32, #tpu.memory_space<vmem>>, vector<1x1x8xf32>
    %78 = vector.shape_cast %77 : vector<1x1x8xf32> to vector<1x8xf32>
    %79 = vector.broadcast %78 : vector<1x8xf32> to vector<8x8xf32>
    %80 = arith.addf %76, %79 : vector<8x8xf32>
    %81 = arith.truncf %66 : vector<8x8xf32> to vector<8x8xbf16>
    %82 = arith.truncf %73 : vector<8x8xf32> to vector<8x8xbf16>
    %cst_64 = arith.constant dense<0.000000e+00> : vector<8x8xf32>
    %83 = tpu.matmul %81, %82, %cst_64 {dimension_numbers = #tpu.dot_dimension_numbers<[1], [1], [0], [0], [0, 0, 1, 0], [], []>} : vector<8x8xbf16>, vector<8x8xbf16>, vector<8x8xf32> -> vector<8x8xf32>
    %84 = vector.broadcast %12 : vector<1x8xf32> to vector<8x8xf32>
    %85 = arith.addf %83, %84 : vector<8x8xf32>
    %cst_65 = arith.constant dense<0xFF800000> : vector<8xf32>
    %86 = vector.multi_reduction <maximumf>, %85, %cst_65 [1] : vector<8x8xf32> to vector<8xf32>
    %87 = vector.shape_cast %86 : vector<8xf32> to vector<8x1xf32>
    %88 = vector.broadcast %87 : vector<8x1xf32> to vector<8x8xf32>
    %89 = arith.subf %85, %88 : vector<8x8xf32>
    %90 = math.exp %89 : vector<8x8xf32>
    %cst_66 = arith.constant dense<0.000000e+00> : vector<8xf32>
    %91 = vector.multi_reduction <add>, %90, %cst_66 [1] : vector<8x8xf32> to vector<8xf32>
    %92 = vector.shape_cast %91 : vector<8xf32> to vector<8x1xf32>
    %93 = tpu.reciprocal %92 {approx = true} : vector<8x1xf32> -> vector<8x1xf32>
    %94 = vector.broadcast %93 : vector<8x1xf32> to vector<8x8xf32>
    %95 = arith.mulf %90, %94 : vector<8x8xf32>
    %96 = arith.truncf %95 : vector<8x8xf32> to vector<8x8xbf16>
    %97 = arith.truncf %80 : vector<8x8xf32> to vector<8x8xbf16>
    %cst_67 = arith.constant dense<0.000000e+00> : vector<8x8xf32>
    %98 = tpu.matmul %96, %97, %cst_67 {dimension_numbers = #tpu.dot_dimension_numbers<[1], [0], [0], [1], [0, 0, 1, 1], [], []>} : vector<8x8xbf16>, vector<8x8xbf16>, vector<8x8xf32> -> vector<8x8xf32>
    %99 = arith.truncf %98 : vector<8x8xf32> to vector<8x8xbf16>
    %c1_68 = arith.constant 1 : index
    %c0_69 = arith.constant 0 : index
    %c0_70 = arith.constant 0 : index
    %100 = vector.load %arg12[%c1_68, %c0_69, %c0_70] : memref<4x8x32xbf16, #tpu.memory_space<vmem>>, vector<1x8x32xbf16>
    %101 = vector.shape_cast %100 : vector<1x8x32xbf16> to vector<8x32xbf16>
    %cst_71 = arith.constant dense<0.000000e+00> : vector<8x32xf32>
    %102 = tpu.matmul %99, %101, %cst_71 {dimension_numbers = #tpu.dot_dimension_numbers<[1], [0], [0], [1], [0, 0, 1, 1], [], []>} : vector<8x8xbf16>, vector<8x32xbf16>, vector<8x32xf32> -> vector<8x32xf32>
    %103 = arith.addf %57, %102 : vector<8x32xf32>
    %c2 = arith.constant 2 : index
    %c0_72 = arith.constant 0 : index
    %c0_73 = arith.constant 0 : index
    %104 = vector.load %arg6[%c2, %c0_72, %c0_73] : memref<4x32x8xbf16, #tpu.memory_space<vmem>>, vector<1x32x8xbf16>
    %105 = vector.shape_cast %104 : vector<1x32x8xbf16> to vector<32x8xbf16>
    %cst_74 = arith.constant dense<0.000000e+00> : vector<8x8xf32>
    %106 = tpu.matmul %1, %105, %cst_74 {dimension_numbers = #tpu.dot_dimension_numbers<[1], [0], [0], [1], [0, 0, 1, 1], [], []>} : vector<8x32xbf16>, vector<32x8xbf16>, vector<8x8xf32> -> vector<8x8xf32>
    %c2_75 = arith.constant 2 : index
    %c0_76 = arith.constant 0 : index
    %c0_77 = arith.constant 0 : index
    %107 = vector.load %arg7[%c2_75, %c0_76, %c0_77] : memref<4x1x8xf32, #tpu.memory_space<vmem>>, vector<1x1x8xf32>
    %108 = vector.shape_cast %107 : vector<1x1x8xf32> to vector<1x8xf32>
    %109 = vector.broadcast %108 : vector<1x8xf32> to vector<8x8xf32>
    %110 = arith.addf %106, %109 : vector<8x8xf32>
    %cst_78 = arith.constant 0.353553385 : f32
    %111 = vector.broadcast %cst_78 : f32 to vector<8x8xf32>
    %112 = arith.mulf %110, %111 : vector<8x8xf32>
    %c2_79 = arith.constant 2 : index
    %c0_80 = arith.constant 0 : index
    %c0_81 = arith.constant 0 : index
    %113 = vector.load %arg8[%c2_79, %c0_80, %c0_81] : memref<4x32x8xbf16, #tpu.memory_space<vmem>>, vector<1x32x8xbf16>
    %114 = vector.shape_cast %113 : vector<1x32x8xbf16> to vector<32x8xbf16>
    %cst_82 = arith.constant dense<0.000000e+00> : vector<8x8xf32>
    %115 = tpu.matmul %3, %114, %cst_82 {dimension_numbers = #tpu.dot_dimension_numbers<[1], [0], [0], [1], [0, 0, 1, 1], [], []>} : vector<8x32xbf16>, vector<32x8xbf16>, vector<8x8xf32> -> vector<8x8xf32>
    %c2_83 = arith.constant 2 : index
    %c0_84 = arith.constant 0 : index
    %c0_85 = arith.constant 0 : index
    %116 = vector.load %arg9[%c2_83, %c0_84, %c0_85] : memref<4x1x8xf32, #tpu.memory_space<vmem>>, vector<1x1x8xf32>
    %117 = vector.shape_cast %116 : vector<1x1x8xf32> to vector<1x8xf32>
    %118 = vector.broadcast %117 : vector<1x8xf32> to vector<8x8xf32>
    %119 = arith.addf %115, %118 : vector<8x8xf32>
    %c2_86 = arith.constant 2 : index
    %c0_87 = arith.constant 0 : index
    %c0_88 = arith.constant 0 : index
    %120 = vector.load %arg10[%c2_86, %c0_87, %c0_88] : memref<4x32x8xbf16, #tpu.memory_space<vmem>>, vector<1x32x8xbf16>
    %121 = vector.shape_cast %120 : vector<1x32x8xbf16> to vector<32x8xbf16>
    %cst_89 = arith.constant dense<0.000000e+00> : vector<8x8xf32>
    %122 = tpu.matmul %5, %121, %cst_89 {dimension_numbers = #tpu.dot_dimension_numbers<[1], [0], [0], [1], [0, 0, 1, 1], [], []>} : vector<8x32xbf16>, vector<32x8xbf16>, vector<8x8xf32> -> vector<8x8xf32>
    %c2_90 = arith.constant 2 : index
    %c0_91 = arith.constant 0 : index
    %c0_92 = arith.constant 0 : index
    %123 = vector.load %arg11[%c2_90, %c0_91, %c0_92] : memref<4x1x8xf32, #tpu.memory_space<vmem>>, vector<1x1x8xf32>
    %124 = vector.shape_cast %123 : vector<1x1x8xf32> to vector<1x8xf32>
    %125 = vector.broadcast %124 : vector<1x8xf32> to vector<8x8xf32>
    %126 = arith.addf %122, %125 : vector<8x8xf32>
    %127 = arith.truncf %112 : vector<8x8xf32> to vector<8x8xbf16>
    %128 = arith.truncf %119 : vector<8x8xf32> to vector<8x8xbf16>
    %cst_93 = arith.constant dense<0.000000e+00> : vector<8x8xf32>
    %129 = tpu.matmul %127, %128, %cst_93 {dimension_numbers = #tpu.dot_dimension_numbers<[1], [1], [0], [0], [0, 0, 1, 0], [], []>} : vector<8x8xbf16>, vector<8x8xbf16>, vector<8x8xf32> -> vector<8x8xf32>
    %130 = vector.broadcast %12 : vector<1x8xf32> to vector<8x8xf32>
    %131 = arith.addf %129, %130 : vector<8x8xf32>
    %cst_94 = arith.constant dense<0xFF800000> : vector<8xf32>
    %132 = vector.multi_reduction <maximumf>, %131, %cst_94 [1] : vector<8x8xf32> to vector<8xf32>
    %133 = vector.shape_cast %132 : vector<8xf32> to vector<8x1xf32>
    %134 = vector.broadcast %133 : vector<8x1xf32> to vector<8x8xf32>
    %135 = arith.subf %131, %134 : vector<8x8xf32>
    %136 = math.exp %135 : vector<8x8xf32>
    %cst_95 = arith.constant dense<0.000000e+00> : vector<8xf32>
    %137 = vector.multi_reduction <add>, %136, %cst_95 [1] : vector<8x8xf32> to vector<8xf32>
    %138 = vector.shape_cast %137 : vector<8xf32> to vector<8x1xf32>
    %139 = tpu.reciprocal %138 {approx = true} : vector<8x1xf32> -> vector<8x1xf32>
    %140 = vector.broadcast %139 : vector<8x1xf32> to vector<8x8xf32>
    %141 = arith.mulf %136, %140 : vector<8x8xf32>
    %142 = arith.truncf %141 : vector<8x8xf32> to vector<8x8xbf16>
    %143 = arith.truncf %126 : vector<8x8xf32> to vector<8x8xbf16>
    %cst_96 = arith.constant dense<0.000000e+00> : vector<8x8xf32>
    %144 = tpu.matmul %142, %143, %cst_96 {dimension_numbers = #tpu.dot_dimension_numbers<[1], [0], [0], [1], [0, 0, 1, 1], [], []>} : vector<8x8xbf16>, vector<8x8xbf16>, vector<8x8xf32> -> vector<8x8xf32>
    %145 = arith.truncf %144 : vector<8x8xf32> to vector<8x8xbf16>
    %c2_97 = arith.constant 2 : index
    %c0_98 = arith.constant 0 : index
    %c0_99 = arith.constant 0 : index
    %146 = vector.load %arg12[%c2_97, %c0_98, %c0_99] : memref<4x8x32xbf16, #tpu.memory_space<vmem>>, vector<1x8x32xbf16>
    %147 = vector.shape_cast %146 : vector<1x8x32xbf16> to vector<8x32xbf16>
    %cst_100 = arith.constant dense<0.000000e+00> : vector<8x32xf32>
    %148 = tpu.matmul %145, %147, %cst_100 {dimension_numbers = #tpu.dot_dimension_numbers<[1], [0], [0], [1], [0, 0, 1, 1], [], []>} : vector<8x8xbf16>, vector<8x32xbf16>, vector<8x32xf32> -> vector<8x32xf32>
    %149 = arith.addf %103, %148 : vector<8x32xf32>
    %c3 = arith.constant 3 : index
    %c0_101 = arith.constant 0 : index
    %c0_102 = arith.constant 0 : index
    %150 = vector.load %arg6[%c3, %c0_101, %c0_102] : memref<4x32x8xbf16, #tpu.memory_space<vmem>>, vector<1x32x8xbf16>
    %151 = vector.shape_cast %150 : vector<1x32x8xbf16> to vector<32x8xbf16>
    %cst_103 = arith.constant dense<0.000000e+00> : vector<8x8xf32>
    %152 = tpu.matmul %1, %151, %cst_103 {dimension_numbers = #tpu.dot_dimension_numbers<[1], [0], [0], [1], [0, 0, 1, 1], [], []>} : vector<8x32xbf16>, vector<32x8xbf16>, vector<8x8xf32> -> vector<8x8xf32>
    %c3_104 = arith.constant 3 : index
    %c0_105 = arith.constant 0 : index
    %c0_106 = arith.constant 0 : index
    %153 = vector.load %arg7[%c3_104, %c0_105, %c0_106] : memref<4x1x8xf32, #tpu.memory_space<vmem>>, vector<1x1x8xf32>
    %154 = vector.shape_cast %153 : vector<1x1x8xf32> to vector<1x8xf32>
    %155 = vector.broadcast %154 : vector<1x8xf32> to vector<8x8xf32>
    %156 = arith.addf %152, %155 : vector<8x8xf32>
    %cst_107 = arith.constant 0.353553385 : f32
    %157 = vector.broadcast %cst_107 : f32 to vector<8x8xf32>
    %158 = arith.mulf %156, %157 : vector<8x8xf32>
    %c3_108 = arith.constant 3 : index
    %c0_109 = arith.constant 0 : index
    %c0_110 = arith.constant 0 : index
    %159 = vector.load %arg8[%c3_108, %c0_109, %c0_110] : memref<4x32x8xbf16, #tpu.memory_space<vmem>>, vector<1x32x8xbf16>
    %160 = vector.shape_cast %159 : vector<1x32x8xbf16> to vector<32x8xbf16>
    %cst_111 = arith.constant dense<0.000000e+00> : vector<8x8xf32>
    %161 = tpu.matmul %3, %160, %cst_111 {dimension_numbers = #tpu.dot_dimension_numbers<[1], [0], [0], [1], [0, 0, 1, 1], [], []>} : vector<8x32xbf16>, vector<32x8xbf16>, vector<8x8xf32> -> vector<8x8xf32>
    %c3_112 = arith.constant 3 : index
    %c0_113 = arith.constant 0 : index
    %c0_114 = arith.constant 0 : index
    %162 = vector.load %arg9[%c3_112, %c0_113, %c0_114] : memref<4x1x8xf32, #tpu.memory_space<vmem>>, vector<1x1x8xf32>
    %163 = vector.shape_cast %162 : vector<1x1x8xf32> to vector<1x8xf32>
    %164 = vector.broadcast %163 : vector<1x8xf32> to vector<8x8xf32>
    %165 = arith.addf %161, %164 : vector<8x8xf32>
    %c3_115 = arith.constant 3 : index
    %c0_116 = arith.constant 0 : index
    %c0_117 = arith.constant 0 : index
    %166 = vector.load %arg10[%c3_115, %c0_116, %c0_117] : memref<4x32x8xbf16, #tpu.memory_space<vmem>>, vector<1x32x8xbf16>
    %167 = vector.shape_cast %166 : vector<1x32x8xbf16> to vector<32x8xbf16>
    %cst_118 = arith.constant dense<0.000000e+00> : vector<8x8xf32>
    %168 = tpu.matmul %5, %167, %cst_118 {dimension_numbers = #tpu.dot_dimension_numbers<[1], [0], [0], [1], [0, 0, 1, 1], [], []>} : vector<8x32xbf16>, vector<32x8xbf16>, vector<8x8xf32> -> vector<8x8xf32>
    %c3_119 = arith.constant 3 : index
    %c0_120 = arith.constant 0 : index
    %c0_121 = arith.constant 0 : index
    %169 = vector.load %arg11[%c3_119, %c0_120, %c0_121] : memref<4x1x8xf32, #tpu.memory_space<vmem>>, vector<1x1x8xf32>
    %170 = vector.shape_cast %169 : vector<1x1x8xf32> to vector<1x8xf32>
    %171 = vector.broadcast %170 : vector<1x8xf32> to vector<8x8xf32>
    %172 = arith.addf %168, %171 : vector<8x8xf32>
    %173 = arith.truncf %158 : vector<8x8xf32> to vector<8x8xbf16>
    %174 = arith.truncf %165 : vector<8x8xf32> to vector<8x8xbf16>
    %cst_122 = arith.constant dense<0.000000e+00> : vector<8x8xf32>
    %175 = tpu.matmul %173, %174, %cst_122 {dimension_numbers = #tpu.dot_dimension_numbers<[1], [1], [0], [0], [0, 0, 1, 0], [], []>} : vector<8x8xbf16>, vector<8x8xbf16>, vector<8x8xf32> -> vector<8x8xf32>
    %176 = vector.broadcast %12 : vector<1x8xf32> to vector<8x8xf32>
    %177 = arith.addf %175, %176 : vector<8x8xf32>
    %cst_123 = arith.constant dense<0xFF800000> : vector<8xf32>
    %178 = vector.multi_reduction <maximumf>, %177, %cst_123 [1] : vector<8x8xf32> to vector<8xf32>
    %179 = vector.shape_cast %178 : vector<8xf32> to vector<8x1xf32>
    %180 = vector.broadcast %179 : vector<8x1xf32> to vector<8x8xf32>
    %181 = arith.subf %177, %180 : vector<8x8xf32>
    %182 = math.exp %181 : vector<8x8xf32>
    %cst_124 = arith.constant dense<0.000000e+00> : vector<8xf32>
    %183 = vector.multi_reduction <add>, %182, %cst_124 [1] : vector<8x8xf32> to vector<8xf32>
    %184 = vector.shape_cast %183 : vector<8xf32> to vector<8x1xf32>
    %185 = tpu.reciprocal %184 {approx = true} : vector<8x1xf32> -> vector<8x1xf32>
    %186 = vector.broadcast %185 : vector<8x1xf32> to vector<8x8xf32>
    %187 = arith.mulf %182, %186 : vector<8x8xf32>
    %188 = arith.truncf %187 : vector<8x8xf32> to vector<8x8xbf16>
    %189 = arith.truncf %172 : vector<8x8xf32> to vector<8x8xbf16>
    %cst_125 = arith.constant dense<0.000000e+00> : vector<8x8xf32>
    %190 = tpu.matmul %188, %189, %cst_125 {dimension_numbers = #tpu.dot_dimension_numbers<[1], [0], [0], [1], [0, 0, 1, 1], [], []>} : vector<8x8xbf16>, vector<8x8xbf16>, vector<8x8xf32> -> vector<8x8xf32>
    %191 = arith.truncf %190 : vector<8x8xf32> to vector<8x8xbf16>
    %c3_126 = arith.constant 3 : index
    %c0_127 = arith.constant 0 : index
    %c0_128 = arith.constant 0 : index
    %192 = vector.load %arg12[%c3_126, %c0_127, %c0_128] : memref<4x8x32xbf16, #tpu.memory_space<vmem>>, vector<1x8x32xbf16>
    %193 = vector.shape_cast %192 : vector<1x8x32xbf16> to vector<8x32xbf16>
    %cst_129 = arith.constant dense<0.000000e+00> : vector<8x32xf32>
    %194 = tpu.matmul %191, %193, %cst_129 {dimension_numbers = #tpu.dot_dimension_numbers<[1], [0], [0], [1], [0, 0, 1, 1], [], []>} : vector<8x8xbf16>, vector<8x32xbf16>, vector<8x32xf32> -> vector<8x32xf32>
    %195 = arith.addf %149, %194 : vector<8x32xf32>
    %c0_130 = arith.constant 0 : index
    %c0_131 = arith.constant 0 : index
    %196 = vector.load %arg13[%c0_130, %c0_131] : memref<1x32xf32, #tpu.memory_space<vmem>>, vector<1x32xf32>
    %197 = vector.broadcast %196 : vector<1x32xf32> to vector<8x32xf32>
    %198 = arith.addf %195, %197 : vector<8x32xf32>
    %199 = arith.extf %1 : vector<8x32xbf16> to vector<8x32xf32>
    %200 = arith.addf %199, %198 : vector<8x32xf32>
    %c0_132 = arith.constant 0 : index
    %c0_133 = arith.constant 0 : index
    %201 = vector.load %arg14[%c0_132, %c0_133] : memref<1x32xf32, #tpu.memory_space<vmem>>, vector<1x32xf32>
    %c0_134 = arith.constant 0 : index
    %c0_135 = arith.constant 0 : index
    %202 = vector.load %arg15[%c0_134, %c0_135] : memref<1x32xf32, #tpu.memory_space<vmem>>, vector<1x32xf32>
    %cst_136 = arith.constant dense<0.000000e+00> : vector<8xf32>
    %203 = vector.multi_reduction <add>, %200, %cst_136 [1] : vector<8x32xf32> to vector<8xf32>
    %204 = vector.shape_cast %203 : vector<8xf32> to vector<8x1xf32>
    %cst_137 = arith.constant 3.200000e+01 : f32
    %205 = vector.broadcast %cst_137 : f32 to vector<8x1xf32>
    %206 = arith.divf %204, %205 : vector<8x1xf32>
    %207 = vector.broadcast %206 : vector<8x1xf32> to vector<8x32xf32>
    %208 = arith.subf %200, %207 : vector<8x32xf32>
    %209 = arith.mulf %208, %208 : vector<8x32xf32>
    %cst_138 = arith.constant dense<0.000000e+00> : vector<8xf32>
    %210 = vector.multi_reduction <add>, %209, %cst_138 [1] : vector<8x32xf32> to vector<8xf32>
    %211 = vector.shape_cast %210 : vector<8xf32> to vector<8x1xf32>
    %cst_139 = arith.constant 3.200000e+01 : f32
    %212 = vector.broadcast %cst_139 : f32 to vector<8x1xf32>
    %213 = arith.divf %211, %212 : vector<8x1xf32>
    %214 = vector.broadcast %206 : vector<8x1xf32> to vector<8x32xf32>
    %215 = arith.subf %200, %214 : vector<8x32xf32>
    %cst_140 = arith.constant 9.99999974E-6 : f32
    %216 = vector.broadcast %cst_140 : f32 to vector<8x1xf32>
    %217 = arith.addf %213, %216 : vector<8x1xf32>
    %218 = math.rsqrt %217 : vector<8x1xf32>
    %219 = vector.broadcast %218 : vector<8x1xf32> to vector<8x32xf32>
    %220 = arith.mulf %215, %219 : vector<8x32xf32>
    %221 = vector.broadcast %201 : vector<1x32xf32> to vector<8x32xf32>
    %222 = arith.mulf %220, %221 : vector<8x32xf32>
    %223 = vector.broadcast %202 : vector<1x32xf32> to vector<8x32xf32>
    %224 = arith.addf %222, %223 : vector<8x32xf32>
    %225 = arith.truncf %224 : vector<8x32xf32> to vector<8x32xbf16>
    %c0_141 = arith.constant 0 : index
    %c0_142 = arith.constant 0 : index
    %226 = vector.load %arg16[%c0_141, %c0_142] : memref<32x128xbf16, #tpu.memory_space<vmem>>, vector<32x128xbf16>
    %cst_143 = arith.constant dense<0.000000e+00> : vector<8x128xf32>
    %227 = tpu.matmul %225, %226, %cst_143 {dimension_numbers = #tpu.dot_dimension_numbers<[1], [0], [0], [1], [0, 0, 1, 1], [], []>} : vector<8x32xbf16>, vector<32x128xbf16>, vector<8x128xf32> -> vector<8x128xf32>
    %c0_144 = arith.constant 0 : index
    %c0_145 = arith.constant 0 : index
    %228 = vector.load %arg17[%c0_144, %c0_145] : memref<1x128xf32, #tpu.memory_space<vmem>>, vector<1x128xf32>
    %229 = vector.broadcast %228 : vector<1x128xf32> to vector<8x128xf32>
    %230 = arith.addf %227, %229 : vector<8x128xf32>
    %cst_146 = arith.constant 0.000000e+00 : f32
    %231 = vector.broadcast %cst_146 : f32 to vector<8x128xf32>
    %232 = arith.maximumf %230, %231 : vector<8x128xf32>
    %233 = arith.truncf %232 : vector<8x128xf32> to vector<8x128xbf16>
    %c0_147 = arith.constant 0 : index
    %c0_148 = arith.constant 0 : index
    %234 = vector.load %arg18[%c0_147, %c0_148] : memref<128x32xbf16, #tpu.memory_space<vmem>>, vector<128x32xbf16>
    %cst_149 = arith.constant dense<0.000000e+00> : vector<8x32xf32>
    %235 = tpu.matmul %233, %234, %cst_149 {dimension_numbers = #tpu.dot_dimension_numbers<[1], [0], [0], [1], [0, 0, 1, 1], [], []>} : vector<8x128xbf16>, vector<128x32xbf16>, vector<8x32xf32> -> vector<8x32xf32>
    %c0_150 = arith.constant 0 : index
    %c0_151 = arith.constant 0 : index
    %236 = vector.load %arg19[%c0_150, %c0_151] : memref<1x32xf32, #tpu.memory_space<vmem>>, vector<1x32xf32>
    %237 = vector.broadcast %236 : vector<1x32xf32> to vector<8x32xf32>
    %238 = arith.addf %235, %237 : vector<8x32xf32>
    %239 = arith.addf %224, %238 : vector<8x32xf32>
    %c0_152 = arith.constant 0 : index
    %c0_153 = arith.constant 0 : index
    %240 = vector.load %arg20[%c0_152, %c0_153] : memref<1x32xf32, #tpu.memory_space<vmem>>, vector<1x32xf32>
    %c0_154 = arith.constant 0 : index
    %c0_155 = arith.constant 0 : index
    %241 = vector.load %arg21[%c0_154, %c0_155] : memref<1x32xf32, #tpu.memory_space<vmem>>, vector<1x32xf32>
    %cst_156 = arith.constant dense<0.000000e+00> : vector<8xf32>
    %242 = vector.multi_reduction <add>, %239, %cst_156 [1] : vector<8x32xf32> to vector<8xf32>
    %243 = vector.shape_cast %242 : vector<8xf32> to vector<8x1xf32>
    %cst_157 = arith.constant 3.200000e+01 : f32
    %244 = vector.broadcast %cst_157 : f32 to vector<8x1xf32>
    %245 = arith.divf %243, %244 : vector<8x1xf32>
    %246 = vector.broadcast %245 : vector<8x1xf32> to vector<8x32xf32>
    %247 = arith.subf %239, %246 : vector<8x32xf32>
    %248 = arith.mulf %247, %247 : vector<8x32xf32>
    %cst_158 = arith.constant dense<0.000000e+00> : vector<8xf32>
    %249 = vector.multi_reduction <add>, %248, %cst_158 [1] : vector<8x32xf32> to vector<8xf32>
    %250 = vector.shape_cast %249 : vector<8xf32> to vector<8x1xf32>
    %cst_159 = arith.constant 3.200000e+01 : f32
    %251 = vector.broadcast %cst_159 : f32 to vector<8x1xf32>
    %252 = arith.divf %250, %251 : vector<8x1xf32>
    %253 = vector.broadcast %245 : vector<8x1xf32> to vector<8x32xf32>
    %254 = arith.subf %239, %253 : vector<8x32xf32>
    %cst_160 = arith.constant 9.99999974E-6 : f32
    %255 = vector.broadcast %cst_160 : f32 to vector<8x1xf32>
    %256 = arith.addf %252, %255 : vector<8x1xf32>
    %257 = math.rsqrt %256 : vector<8x1xf32>
    %258 = vector.broadcast %257 : vector<8x1xf32> to vector<8x32xf32>
    %259 = arith.mulf %254, %258 : vector<8x32xf32>
    %260 = vector.broadcast %240 : vector<1x32xf32> to vector<8x32xf32>
    %261 = arith.mulf %259, %260 : vector<8x32xf32>
    %262 = vector.broadcast %241 : vector<1x32xf32> to vector<8x32xf32>
    %263 = arith.addf %261, %262 : vector<8x32xf32>
    %264 = arith.truncf %263 : vector<8x32xf32> to vector<8x32xbf16>
    %c0_161 = arith.constant 0 : index
    %c0_162 = arith.constant 0 : index
    %c0_163 = arith.constant 0 : index
    %265 = vector.load %arg22[%c0_161, %c0_162, %c0_163] : memref<1x8x32xbf16, #tpu.memory_space<vmem>>, vector<1x8x32xbf16>
    %266 = vector.shape_cast %265 : vector<1x8x32xbf16> to vector<8x32xbf16>
    %267 = vector.shape_cast %264 : vector<8x32xbf16> to vector<1x8x32xbf16>
    tpu.vector_store %arg22[%c0_161, %c0_162, %c0_163], %267 {strides = array<i32>} : memref<1x8x32xbf16, #tpu.memory_space<vmem>>, vector<1x8x32xbf16>,
    return
  }
  func.func @transform_0(%arg0: i32, %arg1: i32) -> (i32, i32, i32) {
    %c0_i32 = arith.constant 0 : i32
    %c0_i32_0 = arith.constant 0 : i32
    %c0_i32_1 = arith.constant 0 : i32
    return %arg0, %c0_i32, %c0_i32_0 : i32, i32, i32
  }
  func.func @transform_1(%arg0: i32, %arg1: i32) -> (i32, i32, i32) {
    %c0_i32 = arith.constant 0 : i32
    %c0_i32_0 = arith.constant 0 : i32
    %c0_i32_1 = arith.constant 0 : i32
    return %arg0, %c0_i32, %c0_i32_0 : i32, i32, i32
  }
  func.func @transform_2(%arg0: i32, %arg1: i32) -> (i32, i32, i32) {
    %c0_i32 = arith.constant 0 : i32
    %c0_i32_0 = arith.constant 0 : i32
    %c0_i32_1 = arith.constant 0 : i32
    return %arg0, %c0_i32, %c0_i32_0 : i32, i32, i32
  }
  func.func @transform_3(%arg0: i32, %arg1: i32) -> (i32, i32, i32) {
    %c0_i32 = arith.constant 0 : i32
    %c0_i32_0 = arith.constant 0 : i32
    return %arg0, %arg1, %c0_i32 : i32, i32, i32
  }
  func.func @transform_4(%arg0: i32, %arg1: i32) -> (i32, i32, i32) {
    %c0_i32 = arith.constant 0 : i32
    %c0_i32_0 = arith.constant 0 : i32
    %c0_i32_1 = arith.constant 0 : i32
    %c0_i32_2 = arith.constant 0 : i32
    return %c0_i32, %c0_i32_0, %c0_i32_1 : i32, i32, i32
  }
  func.func @transform_5(%arg0: i32, %arg1: i32) -> (i32, i32, i32) {
    %c0_i32 = arith.constant 0 : i32
    %c0_i32_0 = arith.constant 0 : i32
    %c0_i32_1 = arith.constant 0 : i32
    %c0_i32_2 = arith.constant 0 : i32
    return %c0_i32, %c0_i32_0, %c0_i32_1 : i32, i32, i32
  }
  func.func @transform_6(%arg0: i32, %arg1: i32) -> (i32, i32, i32) {
    %c0_i32 = arith.constant 0 : i32
    %c0_i32_0 = arith.constant 0 : i32
    %c0_i32_1 = arith.constant 0 : i32
    %c0_i32_2 = arith.constant 0 : i32
    return %c0_i32, %c0_i32_0, %c0_i32_1 : i32, i32, i32
  }
  func.func @transform_7(%arg0: i32, %arg1: i32) -> (i32, i32, i32) {
    %c0_i32 = arith.constant 0 : i32
    %c0_i32_0 = arith.constant 0 : i32
    %c0_i32_1 = arith.constant 0 : i32
    %c0_i32_2 = arith.constant 0 : i32
    return %c0_i32, %c0_i32_0, %c0_i32_1 : i32, i32, i32
  }
  func.func @transform_8(%arg0: i32, %arg1: i32) -> (i32, i32, i32) {
    %c0_i32 = arith.constant 0 : i32
    %c0_i32_0 = arith.constant 0 : i32
    %c0_i32_1 = arith.constant 0 : i32
    %c0_i32_2 = arith.constant 0 : i32
    return %c0_i32, %c0_i32_0, %c0_i32_1 : i32, i32, i32
  }
  func.func @transform_9(%arg0: i32, %arg1: i32) -> (i32, i32, i32) {
    %c0_i32 = arith.constant 0 : i32
    %c0_i32_0 = arith.constant 0 : i32
    %c0_i32_1 = arith.constant 0 : i32
    %c0_i32_2 = arith.constant 0 : i32
    return %c0_i32, %c0_i32_0, %c0_i32_1 : i32, i32, i32
  }
  func.func @transform_10(%arg0: i32, %arg1: i32) -> (i32, i32, i32) {
    %c0_i32 = arith.constant 0 : i32
    %c0_i32_0 = arith.constant 0 : i32
    %c0_i32_1 = arith.constant 0 : i32
    %c0_i32_2 = arith.constant 0 : i32
    return %c0_i32, %c0_i32_0, %c0_i32_1 : i32, i32, i32
  }
  func.func @transform_11(%arg0: i32, %arg1: i32) -> (i32, i32) {
    %c0_i32 = arith.constant 0 : i32
    %c0_i32_0 = arith.constant 0 : i32
    %c0_i32_1 = arith.constant 0 : i32
    return %c0_i32, %c0_i32_0 : i32, i32
  }
  func.func @transform_12(%arg0: i32, %arg1: i32) -> (i32, i32) {
    %c0_i32 = arith.constant 0 : i32
    %c0_i32_0 = arith.constant 0 : i32
    %c0_i32_1 = arith.constant 0 : i32
    return %c0_i32, %c0_i32_0 : i32, i32
  }
  func.func @transform_13(%arg0: i32, %arg1: i32) -> (i32, i32) {
    %c0_i32 = arith.constant 0 : i32
    %c0_i32_0 = arith.constant 0 : i32
    %c0_i32_1 = arith.constant 0 : i32
    return %c0_i32, %c0_i32_0 : i32, i32
  }
  func.func @transform_14(%arg0: i32, %arg1: i32) -> (i32, i32) {
    %c0_i32 = arith.constant 0 : i32
    %c0_i32_0 = arith.constant 0 : i32
    %c0_i32_1 = arith.constant 0 : i32
    return %c0_i32, %c0_i32_0 : i32, i32
  }
  func.func @transform_15(%arg0: i32, %arg1: i32) -> (i32, i32) {
    %c0_i32 = arith.constant 0 : i32
    %c0_i32_0 = arith.constant 0 : i32
    %c0_i32_1 = arith.constant 0 : i32
    return %c0_i32, %c0_i32_0 : i32, i32
  }
  func.func @transform_16(%arg0: i32, %arg1: i32) -> (i32, i32) {
    %c0_i32 = arith.constant 0 : i32
    %c0_i32_0 = arith.constant 0 : i32
    %c0_i32_1 = arith.constant 0 : i32
    return %c0_i32, %c0_i32_0 : i32, i32
  }
  func.func @transform_17(%arg0: i32, %arg1: i32) -> (i32, i32) {
    %c0_i32 = arith.constant 0 : i32
    %c0_i32_0 = arith.constant 0 : i32
    %c0_i32_1 = arith.constant 0 : i32
    return %c0_i32, %c0_i32_0 : i32, i32
  }
  func.func @transform_18(%arg0: i32, %arg1: i32) -> (i32, i32) {
    %c0_i32 = arith.constant 0 : i32
    %c0_i32_0 = arith.constant 0 : i32
    %c0_i32_1 = arith.constant 0 : i32
    return %c0_i32, %c0_i32_0 : i32, i32
  }
  func.func @transform_19(%arg0: i32, %arg1: i32) -> (i32, i32) {
    %c0_i32 = arith.constant 0 : i32
    %c0_i32_0 = arith.constant 0 : i32
    %c0_i32_1 = arith.constant 0 : i32
    return %c0_i32, %c0_i32_0 : i32, i32
  }
  func.func @transform_20(%arg0: i32, %arg1: i32) -> (i32, i32, i32) {
    %c0_i32 = arith.constant 0 : i32
    %c0_i32_0 = arith.constant 0 : i32
    return %arg0, %arg1, %c0_i32 : i32, i32, i32
  }
}

</mosaic_0001>

<bundles_post_ra>
// kernel: tpu_custom_call.1
= control target key start
LH: loop header
LB: loop body
LE: loop exit
PB: predicated region body
PF: predicated region fallthrough
CT: control target
= control target key end

     0   :  { %s2680_s0 = inlined_call_operand.vmem [shape: bf16[2,1,8], index: 0, kind: input, shape index: {}]   ;;  %s2681_s1 = inlined_call_operand.vmem [shape: bf16[2,8,32], index: 1, kind: input, shape index: {}]   ;;  %s2682_s2 = inlined_call_operand.vmem [shape: bf16[2,8,32], index: 2, kind: input, shape index: {}]   ;;  %s2683_s3 = inlined_call_operand.vmem [shape: bf16[2,8,32], index: 3, kind: input, shape index: {}]   ;;  %s2684_s4 = inlined_call_operand.vmem [shape: bf16[4,32,8], index: 4, kind: input, shape index: {}]   ;;  %s2685_s5 = inlined_call_operand.vmem [shape: f32[4,1,8], index: 5, kind: input, shape index: {}]   ;;  %s2686_s6 = inlined_call_operand.vmem [shape: bf16[4,32,8], index: 6, kind: input, shape index: {}]   ;;  %s2687_s7 = inlined_call_operand.vmem [shape: f32[4,1,8], index: 7, kind: input, shape index: {}]   ;;  %s2688_s8 = inlined_call_operand.vmem [shape: bf16[4,32,8], index: 8, kind: input, shape index: {}]   ;;  %s2689_s9 = inlined_call_operand.vmem [shape: f32[4,1,8], index: 9, kind: input, shape index: {}]   ;;  %s2690_s10 = inlined_call_operand.vmem [shape: bf16[4,8,32], index: 10, kind: input, shape index: {}]   ;;  %s2691_s11 = inlined_call_operand.vmem [shape: f32[1,32], index: 11, kind: input, shape index: {}]   ;;  %s2692_s12 = inlined_call_operand.vmem [shape: f32[1,32], index: 12, kind: input, shape index: {}]   ;;  %s2693_s13 = inlined_call_operand.vmem [shape: f32[1,32], index: 13, kind: input, shape index: {}]   ;;  %s2694_s14 = inlined_call_operand.vmem [shape: bf16[32,128], index: 14, kind: input, shape index: {}]   ;;  %s2695_s15 = inlined_call_operand.vmem [shape: f32[1,128], index: 15, kind: input, shape index: {}]   ;;  %s2696_s16 = inlined_call_operand.vmem [shape: bf16[128,32], index: 16, kind: input, shape index: {}]   ;;  %s2697_s17 = inlined_call_operand.vmem [shape: f32[1,32], index: 17, kind: input, shape index: {}]   ;;  %s2698_s18 = inlined_call_operand.vmem [shape: f32[1,32], index: 18, kind: input, shape index: {}]   ;;  %s2699_s19 = inlined_call_operand.vmem [shape: f32[1,32], index: 19, kind: input, shape index: {}]   ;;  %s2700_s20 = inlined_call_operand.hbm [shape: bf16[2,8,32], index: 20, kind: output, shape index: {}]  }
   0x1   :  { %2713 = sst [smem:[#allocation14_spill]] %s2680_s0 }
   0x2   :  { %2714 = sst [smem:[#allocation15_spill]] %s2681_s1 }
   0x3   :  { %2715 = sst [smem:[#allocation16_spill]] %s2682_s2 }
   0x4   :  { %2716 = sst [smem:[#allocation17_spill]] %s2683_s3 }
   0x5   :  { %2717 = sst [smem:[#allocation18_spill]] %s2684_s4 }
   0x6   :  { %2718 = sst [smem:[#allocation19_spill]] %s2685_s5 }
   0x7   :  { %2719 = sst [smem:[#allocation20_spill]] %s2698_s18 }
   0x8   :  { %2720 = sst [smem:[#allocation21_spill]] %s2699_s19 }
   0x9   :  { %2721 = sst [smem:[#allocation22_spill]] %s2700_s20 }
   0xa   :  { %25 = vsyncpa [#allocation3], 0 }
   0xb   :  { %27 = vsyncpa [#allocation3 + $0x1], 0  ;;  %s2308_s1 = smov 0   ;;  %s2310_s22 = smov 0  }
   0xc   :  { %s2312_s23 = smov 0   ;;  %s2314_s24 = smov 0  }
   0xd   :  { %s2316_s2 = smov 0   ;;  %s2318_s25 = smov 0  }
   0xe LB: > { %2722 = sst [smem:[#allocation5_spill]] %s2179_s1  ;;  %s1767_s3 = sadd.s32 4294967295, %s2199_s25   ;;  %s2199_s25 = sphi %s2318_s25, %s33_s25   ;;  %s2195_s2 = sphi %s2316_s2, %s2750_s2   ;;  %s2191_s24 = sphi %s2314_s24, %s2749_s24   ;;  %s2187_s23 = sphi %s2312_s23, %s2748_s23   ;;  %s2183_s22 = sphi %s2310_s22, %s2752_s22   ;;  %s2179_s1 = sphi %s2308_s1, %s2751_s1  }
   0xf   : > { %2723 = sst [smem:[#allocation6_spill]] %s2187_s23  ;;  %s1768_s26 = sadd.s32 4294967294, %s2199_s25  }
  0x10   : > { %2724 = sst [smem:[#allocation7_spill]] %s2191_s24  ;;  %s45_s27 = sadd.s32 1, %s2195_s2 }
  0x11   : > { %2725 = sst [smem:[#allocation8_spill]] %s2195_s2  ;;  %s496_s28 = sadd.s32 1, %s2187_s23 }
  0x12   : > { %2726 = sst [smem:[#allocation9_spill]] %s2199_s25  ;;  %p47_p0 = scmp.ge.s32.totalorder %s45_s27, 2 }
  0x13   : > { %p506_p1 = scmp.ne.s32.totalorder %s2187_s23, %s2183_s22  ;;  %p507_p2 = scmp.eq.s32.totalorder %s1767_s3, 1 }
  0x14   : > { %p512_p3 = scmp.ne.s32.totalorder %s2183_s22, %s2179_s1  ;;  %s2754_s27 = smov (%p47_p0, %s45_s27), 0 }
  0x15   : > { %2727 = sst [smem:[#allocation10_spill]] %s2754_s27  ;;  %p2348_p4 = por %p507_p2, %p506_p1 }
  0x16   : > { %p513_p5 = scmp.eq.s32.totalorder %s1768_s26, 1  ;;  %s491_s29 = ssub.s32 %s2195_s2, %s2754_s27 }
  0x17   : > { %s2728_s4 = scalar_select %p2348_p4, 1, 0 }
  0x18   : > { %p1771_p6 = scmp.ge.s32.totalorder %s2199_s25, 1  ;;  %p494_p7 = scmp.eq.s32.totalorder %s491_s29, 0 }
  0x19   : > { %2729 = sst [smem:[#allocation11_spill]] %s2728_s4  ;;  %p2355_p8 = por %p513_p5, %p512_p3 }
  0x1a   : > { %p609_p9 = scmp.lt.s32.totalorder %s2199_s25, 3 }
  0x1b   : > { %s2730_s30 = scalar_select %p2355_p8, 1, 0 }
  0x1c   : > { %s2361_s0 = scalar_select %p494_p7, %s2187_s23, %s496_s28  }
  0x1d   : > { %2731 = sst [smem:[#allocation12_spill]] %s2730_s30  ;;  %p610_p10 = pnand %p1771_p6, %p609_p9 }
  0x1e   : > { %2732 = sst [smem:[#allocation13_spill]] %s2361_s0  ;;  %p680_p11 = scmp.lt.s32.totalorder (!%p610_p10), %s2191_s24, 1 }
  0x1f   : > { %613 = sbr.rel (%p610_p10) target bundleno = 3127 (0xc37), region = 100  ;;  %s2733_s27 = sld [smem:[#allocation18_spill]] (!%p610_p10) }
  0x20   : > { %s2734_s26 = sld [smem:[#allocation16_spill]] (!%p610_p10) }
  0x21   : > { %s2735_s25 = sld [smem:[#allocation17_spill]] (!%p610_p10) }
  0x22   : > { %s2736_s5 = sld [smem:[#allocation19_spill]] (!%p610_p10) }
  0x23   : > { %s2737_s23 = sld [smem:[#allocation15_spill]] (!%p610_p10) }
  0x24   : > { %v1992_v0 = vld [vmem:[%s2686_s6 + $0x8] sm:$0xff]  ;;  %v1991_v2 = vld [vmem:[%s2686_s6] sm:$0xff]  ;;  %s2374_s28 = scalar_select %p680_p11, %s2191_s24, 1  ;;  %vm726_vm0 = vcmask 261120   ;;  %vm819_vm1 = vcmask 64512   ;;  %v1998_v20 = vld [vmem:[%s2686_s6 + $0x18] sm:$0xff] }
  0x25   : > { %v1990_v1 = vld [vmem:[%s2733_s27 + $0x8] sm:$0xff]  ;;  %773 = vmatpush.bf16.msra.mxu2 %v1992_v0  ;;  %v1989_v3 = vld [vmem:[%s2733_s27] sm:$0xff]  ;;  %s2738_s18 = sld [smem:[#allocation14_spill]]  ;;  %v2201_v24 = vmov 0.0   ;;  %v1997_v31 = vld [vmem:[%s2686_s6 + $0x10] sm:$0xff]  ;;  %vm855_vm3 = vcmask 1043456  }
  0x26   : > { %736 = vmatpush.bf16.msra.mxu0 %v1990_v1  ;;  %s2380_s21 = sshll.u32 %s2374_s28, 2  ;;  %v2081_v8 = vld [vmem:[%s2687_s7] ss:$0 sm:$0xff]  ;;  %v1994_v18 = vld [vmem:[%s2688_s8 + $0x8] sm:$0xff]  ;;  %v1996_v32 = vld [vmem:[%s2733_s27 + $0x18] sm:$0xff]  ;;  %s2740_s20 = sld [smem:[#allocation20_spill]] }
  0x27   : > { %s690_s30 = scalar_lea.vmem %s2734_s26, %s2380_s21  ;;  %s697_s4 = scalar_lea.vmem %s2735_s25, %s2380_s21  ;;  %v1993_v19 = vld [vmem:[%s2688_s8] sm:$0xff]  ;;  %902 = vmatpush.bf16.msra.mxu1 %v1996_v32  ;;  %v1995_v33 = vld [vmem:[%s2733_s27 + $0x10] sm:$0xff]  ;;  %v2000_v53 = vld [vmem:[%s2688_s8 + $0x18] sm:$0xff]  ;;  %vm1638_vm11 = vcmask 257024  }
  0x28   : > { %v2390_v4 = vld [vmem:[%s690_s30] sm:$0xf]  ;;  %v1999_v54 = vld [vmem:[%s2688_s8 + $0x10] sm:$0xff]  ;;  %s2742_s30 = sld [smem:[#allocation22_spill]] }
  0x29   : > { %774 = vmatpush.bf16.msra.mxu2 %v1991_v2  ;;  %v2392_v5 = vld [vmem:[%s697_s4] sm:$0xf]  ;;  %s686_s0 = scalar_lea.vmem %s2737_s23, %s2380_s21  ;;  %s2739_s23 = sld [smem:[#allocation7_spill]] }
  0x2a   : > { %737 = vmatpush.bf16.msra.mxu0 %v1989_v3  ;;  %v2080_v7 = vld [vmem:[%s2736_s5] ss:$0 sm:$0xff]  ;;  %v2083_v46 = vld [vmem:[%s2687_s7 + $0x1] ss:$0 sm:$0xff]  ;;  %s2741_s21 = sld [smem:[#allocation21_spill]] }
  0x2b   : > { %s682_s24 = scalar_lea.vmem %s2738_s18, %s2374_s28  ;;  %v2423_v21 = vld [vmem:[%s686_s0] sm:$0xf]  ;;  %903 = vmatpush.bf16.msra.mxu1 %v1995_v33  ;;  %v1849_v33 = vld [vmem:[%s2690_s10 + $0x4] sm:$0xf]  ;;  %s677_s0 = sand.u32 1, %s2183_s22  }
  0x2c   : > { %1793 = vmatmul.msk.bf16.vlgmr.msra.gmra.mxu2 %vm726_vm0, %v2390_v4  ;;  %v702_v22 = vld [vmem:[%s682_s24] sm:$0x1]  ;;  %v2084_v59 = vld [vmem:[%s2736_s5 + $0x1] ss:$0 sm:$0xff]  ;;  %s1772_s3 = sshll.u32 %s677_s0, 2  ;;  %s1641_s18 = scalar_lea.sflag [#allocation3], %s677_s0 }
  0x2d   : > { %1784 = vmatmul.msk.bf16.vlgmr.msra.gmra.mxu0 %vm726_vm0, %v2392_v5  ;;  %809 = vmatpush.bf16.msrb.mxu2 %v1994_v18  ;;  %v703_v23 = vunpack.c.l.bf16 %v702_v22  ;;  %v2082_v41 = vld [vmem:[%s2689_s9] ss:$0 sm:$0xff]  ;;  %s679_s29 = scalar_lea.vmem [#allocation2], %s1772_s3 }
  0x2e   : > { %1818 = vmatmul.msk.bf16.vlgmr.msra.gmra.mxu1 %vm726_vm0, %v2392_v5  ;;  %v873_v63 = vld [vmem:[%s2690_s10] sm:$0xf]  ;;  %s2141_s3 = scalar_lea.hbm %s2742_s30, 8 }
  0x2f   : > { %vm704_vm2 = vcmp.eq.f32.partialorder %v703_v23, 0.0  ;;  %v1059_v0 = vsel %vm855_vm3, %v873_v63, 0  ;;  %s1986_s1 = sshll.u32 %s2739_s23, 2 }
  0x30   : > { %v705_v25 = vsel %vm704_vm2, -1e+09, %v2201_v24  ;;  %v2004_v24 = vld [vmem:[%s2686_s6 + $0x28] sm:$0xff]  ;;  %s1652_s26 = scalar_lea.hbm %s2742_s30, %s1986_s1 }
  0x31   : > { %810 = vmatpush.bf16.msrb.mxu2 %v1993_v19  ;;  %v2427_v26 = vperm.slane %v705_v25, 0  ;;  %v2085_v19 = vld [vmem:[%s2689_s9 + $0x1] ss:$0 sm:$0xff]  ;;  %v2002_v25 = vld [vmem:[%s2733_s27 + $0x28] sm:$0xff]  ;;  %s1656_s23 = sshll.u32 %s1652_s26, 4  ;;  %s1657_s23 = int_to_ptr.hbm [resolvable:$true] %s1656_s23 }
  0x32   : > { %s2135_s19 = sshra.s32 %s1657_s23, 4  ;;  %s2136_s19 = int_to_ptr.hbm [resolvable:$true] %s2135_s19 }
  0x33   : > { %p2142_p1 = scmp.lt.s32.totalorder %s2136_s19, %s2742_s30 }
  0x35   : > { %938 = vmatpush.bf16.msra.mxu2 %v1998_v20 }
  0x39   : > { %939 = vmatpush.bf16.msra.mxu2 %v1997_v31 }
  0x3c   : > { %1802 = vmatmul.msk.bf16.vlgmr.msrb.gmra.mxu2 %vm726_vm0, %v2423_v21 }
  0x4c   : > { %1832 = vmatmul.msk.bf16.vlgmr.msra.gmra.mxu2 %vm726_vm0, %v2390_v4 }
  0xaa   : > { %v739_v6 = vpop.f32.mrf.mxu0 }
  0xab   : > { %v740_v10 = vadd.f32 %v2080_v7, %v739_v6  ;;  %v905_v49 = vpop.f32.mrf.mxu1 }
  0xac   : > { %v906_v60 = vadd.f32 %v2084_v59, %v905_v49  ;;  %v2088_v59 = vld [vmem:[%s2689_s9 + $0x2] ss:$0 sm:$0xff] }
  0xad   : > { %v743_v14 = vmul.f32 0.35355338, %v740_v10 }
  0xae   : > { %v909_v61 = vmul.f32 0.35355338, %v906_v60 }
  0xaf   : > { %v776_v9 = vpop.f32.mrf.mxu2  ;;  %v816_v17 = vpack.c.bf16 %v743_v14, %v743_v14 }
  0xb0   : > { %v777_v11 = vadd.f32 %v2081_v8, %v776_v9  ;;  %v980_v62 = vpack.c.bf16 %v909_v61, %v909_v61 }
  0xb2   : > { %v741_v12 = vpop.f32.mrf.mxu0  ;;  %v817_v13 = vpack.c.bf16 %v777_v11, %v777_v11 }
  0xb3   : > { %v907_v52 = vpop.f32.mrf.mxu1 }
  0xb4   : > { %v824_v15 = vsel %vm819_vm1, %v817_v13, 0  ;;  %v2005_v52 = vld [vmem:[%s2688_s8 + $0x20] sm:$0xff] }
  0xb5   : > { %833 = vmatpush.bf16.xpose.msra.mxu3 %v824_v15 }
  0xb7   : > { %v778_v16 = vpop.f32.mrf.mxu2 }
  0xbc   : > { %1803 = vmatmul.msk.bf16.vlgmr.msra.gmra.mxu3 %vm819_vm1, %v816_v17 }
  0xbd   : > { %973 = vmatpush.bf16.msrb.mxu3 %v2000_v53 }
  0xbf   : > { %v812_v34 = vpop.f32.mrf.mxu2 }
  0xc0   : > { %v813_v42 = vadd.f32 %v2082_v41, %v812_v34  ;;  %v1040_v34 = vsel %vm855_vm3, %v1849_v33, 0  ;;  %v2087_v41 = vld [vmem:[%s2736_s5 + $0x2] ss:$0 sm:$0xff] }
  0xc1   : > { %974 = vmatpush.bf16.msrb.mxu3 %v1999_v54  ;;  %1049 = vmatpush.bf16.msrb.mxu2 %v1040_v34  ;;  %v2012_v34 = vld [vmem:[%s2688_s8 + $0x38] sm:$0xff] }
  0xc2   : > { %v851_v43 = vpack.c.bf16 %v813_v42, %v813_v42 }
  0xc4   : > { %v857_v44 = vsel %vm855_vm3, %v851_v43, 0 }
  0xc5   : > { %866 = vmatpush.bf16.msrb.mxu0 %v857_v44  ;;  %1068 = vmatpush.bf16.msra.mxu3 %v1059_v0 }
  0xc7   : > { %v814_v38 = vpop.f32.mrf.mxu2 }
  0xcc   : > { %1846 = vmatmul.msk.bf16.vlgmr.msrb.gmra.mxu3 %vm726_vm0, %v2423_v21 }
  0xcf   : > { %v941_v45 = vpop.f32.mrf.mxu2 }
  0xd0   : > { %v942_v47 = vadd.f32 %v2083_v46, %v941_v45 }
  0xd2   : > { %v981_v48 = vpack.c.bf16 %v942_v47, %v942_v47 }
  0xd4   : > { %v986_v50 = vsel %vm819_vm1, %v981_v48, 0 }
  0xd5   : > { %995 = vmatpush.bf16.xpose.msra.mxu0 %v986_v50 }
  0xd7   : > { %v943_v51 = vpop.f32.mrf.mxu2 }
  0xd8   : > { %v2006_v51 = vld [vmem:[%s2688_s8 + $0x28] sm:$0xff] }
  0xd9   : > { %1173 = vmatpush.bf16.msra.mxu2 %v2006_v51 }
  0xdd   : > { %1174 = vmatpush.bf16.msra.mxu2 %v2005_v52  ;;  %v1942_v52 = vld [vmem:[%s2690_s10 + $0xc] sm:$0xf] }
 0x13f   : > { %v835_v27 = vpop.f32.mrf.mxu3 }
 0x140   : > { %v836_v28 = vadd.f32 %v835_v27, %v2427_v26  ;;  %v2003_v27 = vld [vmem:[%s2686_s6 + $0x20] sm:$0xff] }
 0x142   : > { %v839_v29 = vsel %vm819_vm1, %v836_v28, -inf }
 0x143   : > { %840 = vmax.xlane.f32.xlu0 %v839_v29 }
 0x147   : > { %v837_v30 = vpop.f32.mrf.mxu3 }
 0x14f   : > { %v976_v1 = vpop.f32.mrf.mxu3 }
 0x150   : > { %v977_v20 = vadd.f32 %v2085_v19, %v976_v1 }
 0x152   : > { %v1013_v22 = vpack.c.bf16 %v977_v20, %v977_v20 }
 0x154   : > { %v1018_v23 = vsel %vm855_vm3, %v1013_v22, 0 }
 0x155   : > { %1027 = vmatpush.bf16.msrb.mxu1 %v1018_v23 }
 0x157   : > { %v978_v6 = vpop.f32.mrf.mxu3 }
 0x159   : > { %1138 = vmatpush.bf16.msra.mxu1 %v2004_v24 }
 0x15d   : > { %1139 = vmatpush.bf16.msra.mxu1 %v2003_v27 }
 0x1b6   : > { %v841_v35 = vpop.xlane.xlu0 %840 }
 0x1b7   : > { %v842_v36 = vsub.f32 %v836_v28, %v841_v35  ;;  %v2001_v28 = vld [vmem:[%s2733_s27 + $0x20] sm:$0xff] }
 0x1b9   : > { %v843_v37 = vmul.f32 1.442695, %v842_v36 }
 0x1bb   : > { %2099 = vpow2.f32 %v843_v37 }
 0x1c1   : > { %v2100_v39 = vpop.eup %2099 }
 0x1c2   : > { %v845_v40 = vsel %vm819_vm1, %v2100_v39, 0.0 }
 0x1c3   : > { %846 = vadd.xlane.f32.xlu0 %v845_v40  ;;  %v2086_v40 = vld [vmem:[%s2687_s7 + $0x2] ss:$0 sm:$0xff] }
 0x236   : > { %v847_v55 = vpop.xlane.xlu0 %846 }
 0x237   : > { %2101 = vrcp.f32 %v847_v55 }
 0x23d   : > { %v2102_v56 = vpop.eup %2101 }
 0x23e   : > { %v849_v57 = vmul.f32 %v2102_v56, %v2100_v39 }
 0x240   : > { %v850_v58 = vpack.c.bf16 %v849_v57, %v849_v57 }
 0x242   : > { %1804 = vmatmul.msk.bf16.vlgmr.msrb.gmra.mxu0 %vm819_vm1, %v850_v58  ;;  %v2010_v58 = vld [vmem:[%s2686_s6 + $0x38] sm:$0xff] }
 0x243   : > { %1102 = vmatpush.bf16.msrb.mxu0 %v2002_v25 }
 0x247   : > { %1103 = vmatpush.bf16.msrb.mxu0 %v2001_v28 }
 0x252   : > { %1847 = vmatmul.msk.bf16.vlgmr.msra.gmra.mxu0 %vm819_vm1, %v980_v62 }
 0x262   : > { %1865 = vmatmul.msk.bf16.vlgmr.msrb.gmra.mxu0 %vm726_vm0, %v2392_v5 }
 0x2bf   : > { %v868_v2 = vpop.f32.mrf.mxu0 }
 0x2c0   : > { %v872_v3 = vpack.c.bf16 %v868_v2, %v868_v2 }
 0x2c2   : > { %1851 = vmatmul.msk.bf16.vlgmr.msra.gmra.mxu3 %vm819_vm1, %v872_v3 }
 0x2c7   : > { %v870_v7 = vpop.f32.mrf.mxu0 }
 0x2cf   : > { %v997_v8 = vpop.f32.mrf.mxu0 }
 0x2d0   : > { %v998_v9 = vadd.f32 %v997_v8, %v2427_v26  ;;  %v2009_v8 = vld [vmem:[%s2686_s6 + $0x30] sm:$0xff] }
 0x2d2   : > { %v1001_v10 = vsel %vm819_vm1, %v998_v9, -inf }
 0x2d3   : > { %1002 = vmax.xlane.f32.xlu1 %v1001_v10  ;;  %v2007_v10 = vld [vmem:[%s2733_s27 + $0x30] sm:$0xff] }
 0x2d7   : > { %v999_v11 = vpop.f32.mrf.mxu0 }
 0x2d8   : > { %v1896_v11 = vld [vmem:[%s2690_s10 + $0x8] sm:$0xf] }
 0x2df   : > { %v1105_v35 = vpop.f32.mrf.mxu0 }
 0x2e0   : > { %v1106_v44 = vadd.f32 %v2087_v41, %v1105_v35  ;;  %v2011_v35 = vld [vmem:[%s2688_s8 + $0x30] sm:$0xff] }
 0x2e2   : > { %v1109_v47 = vmul.f32 0.35355338, %v1106_v44  ;;  %v2091_v44 = vld [vmem:[%s2689_s9 + $0x3] ss:$0 sm:$0xff] }
 0x2e4   : > { %v1180_v49 = vpack.c.bf16 %v1109_v47, %v1109_v47 }
 0x2e7   : > { %v1107_v36 = vpop.f32.mrf.mxu0 }
 0x345   : > { %v2473_v12 = vpop.f32.mrf.mxu3 }
 0x346   : > { %v1003_v13 = vpop.xlane.xlu1 %1002 }
 0x347   : > { %v1004_v14 = vsub.f32 %v998_v9, %v1003_v13  ;;  %v2008_v9 = vld [vmem:[%s2733_s27 + $0x38] sm:$0xff]  ;;  %v1240_v13 = vsel %vm855_vm3, %v1896_v11, 0 }
 0x349   : > { %v1005_v15 = vmul.f32 1.442695, %v1004_v14 }
 0x34b   : > { %2103 = vpow2.f32 %v1005_v15 }
 0x34d   : > { %v1072_v16 = vpop.f32.mrf.mxu3 }
 0x351   : > { %v2104_v17 = vpop.eup %2103 }
 0x352   : > { %v1007_v18 = vsel %vm819_vm1, %v2104_v17, 0.0 }
 0x353   : > { %1008 = vadd.xlane.f32.xlu1 %v1007_v18 }
 0x3c6   : > { %v1009_v29 = vpop.xlane.xlu1 %1008 }
 0x3c7   : > { %2105 = vrcp.f32 %v1009_v29  ;;  %v2090_v29 = vld [vmem:[%s2736_s5 + $0x3] ss:$0 sm:$0xff]  ;;  %s1654_s5 = sshll.u32 %s679_s29, 4  ;;  %s1655_s5 = int_to_ptr.vmem [resolvable:$true] %s1654_s5 }
 0x3cd   : > { %v2106_v30 = vpop.eup %2105 }
 0x3ce   : > { %v1011_v31 = vmul.f32 %v2106_v30, %v2104_v17  ;;  %v2089_v17 = vld [vmem:[%s2687_s7 + $0x3] ss:$0 sm:$0xff] }
 0x3d0   : > { %v1012_v32 = vpack.c.bf16 %v1011_v31, %v1011_v31 }
 0x3d2   : > { %1848 = vmatmul.msk.bf16.vlgmr.msrb.gmra.mxu1 %vm819_vm1, %v1012_v32 }
 0x3d3   : > { %1249 = vmatpush.bf16.msrb.mxu1 %v1240_v13 }
 0x3e2   : > { %1879 = vmatmul.msk.bf16.vlgmr.msra.gmra.mxu1 %vm726_vm0, %v2390_v4 }
 0x44f   : > { %v1029_v37 = vpop.f32.mrf.mxu1 }
 0x450   : > { %v1033_v38 = vpack.c.bf16 %v1029_v37, %v1029_v37 }
 0x452   : > { %1850 = vmatmul.msk.bf16.vlgmr.msrb.gmra.mxu2 %vm819_vm1, %v1033_v38 }
 0x453   : > { %1284 = vmatpush.bf16.msrb.mxu2 %v2008_v9 }
 0x457   : > { %v1031_v39 = vpop.f32.mrf.mxu1  ;;  %1285 = vmatpush.bf16.msrb.mxu2 %v2007_v10 }
 0x45f   : > { %v1141_v42 = vpop.f32.mrf.mxu1 }
 0x460   : > { %v1142_v43 = vadd.f32 %v2086_v40, %v1141_v42 }
 0x462   : > { %v1181_v45 = vpack.c.bf16 %v1142_v43, %v1142_v43  ;;  %1893 = vmatmul.msk.bf16.vlgmr.msra.gmra.mxu2 %vm726_vm0, %v2423_v21 }
 0x464   : > { %v1186_v46 = vsel %vm819_vm1, %v1181_v45, 0 }
 0x465   : > { %1195 = vmatpush.bf16.xpose.msrb.mxu3 %v1186_v46 }
 0x467   : > { %v1143_v48 = vpop.f32.mrf.mxu1 }
 0x46c   : > { %1894 = vmatmul.msk.bf16.vlgmr.msrb.gmra.mxu3 %vm819_vm1, %v1180_v49 }
 0x46d   : > { %1320 = vmatpush.bf16.msra.mxu3 %v2010_v58 }
 0x471   : > { %1321 = vmatpush.bf16.msra.mxu3 %v2009_v8 }
 0x472   : > { %1911 = vmatmul.msk.bf16.vlgmr.msrb.gmra.mxu2 %vm726_vm0, %v2392_v5 }
 0x47c   : > { %1925 = vmatmul.msk.bf16.vlgmr.msra.gmra.mxu3 %vm726_vm0, %v2390_v4 }
 0x4d5   : > { %v2510_v50 = vpop.f32.mrf.mxu2 }
 0x4d6   : > { %v1071_v36 = vadd.f32 %v2473_v12, %v2510_v50 }
 0x4dd   : > { %v1053_v53 = vpop.f32.mrf.mxu2 }
 0x4de   : > { %v1422_v53 = vsel %vm855_vm3, %v1942_v52, 0 }
 0x4df   : > { %1431 = vmatpush.bf16.msrb.mxu3 %v1422_v53 }
 0x4e5   : > { %v1176_v60 = vpop.f32.mrf.mxu2 }
 0x4e6   : > { %v1177_v61 = vadd.f32 %v2088_v59, %v1176_v60 }
 0x4e8   : > { %v1213_v63 = vpack.c.bf16 %v1177_v61, %v1177_v61  ;;  %v2092_v61 = vld [vmem:[%s2691_s11] ss:$0 sm:$0xff] }
 0x4ea   : > { %v1218_v1 = vsel %vm855_vm3, %v1213_v63, 0 }
 0x4eb   : > { %1227 = vmatpush.bf16.msra.mxu0 %v1218_v1 }
 0x4ed   : > { %v1178_v3 = vpop.f32.mrf.mxu2 }
 0x4ef   : > { %v1197_v54 = vpop.f32.mrf.mxu3  ;;  %1355 = vmatpush.bf16.msrb.mxu0 %v2012_v34  ;;  %v2017_v34 = vld [vmem:[%s2696_s16 + $0x10] sm:$0xff] }
 0x4f0   : > { %v1198_v55 = vadd.f32 %v1197_v54, %v2427_v26 }
 0x4f2   : > { %v1201_v56 = vsel %vm819_vm1, %v1198_v55, -inf }
 0x4f3   : > { %1202 = vmax.xlane.f32.xlu2 %v1201_v56  ;;  %1356 = vmatpush.bf16.msrb.mxu0 %v2011_v35 }
 0x4f5   : > { %v1287_v23 = vpop.f32.mrf.mxu2 }
 0x4f6   : > { %v1288_v30 = vadd.f32 %v2090_v29, %v1287_v23 }
 0x4f7   : > { %v1199_v57 = vpop.f32.mrf.mxu3 }
 0x4f8   : > { %v1291_v32 = vmul.f32 0.35355338, %v1288_v30 }
 0x4fa   : > { %v1362_v33 = vpack.c.bf16 %v1291_v32, %v1291_v32 }
 0x4fd   : > { %v1289_v25 = vpop.f32.mrf.mxu2 }
 0x4ff   : > { %v1323_v18 = vpop.f32.mrf.mxu3 }
 0x500   : > { %v1324_v19 = vadd.f32 %v2089_v17, %v1323_v18  ;;  %v2014_v18 = vld [vmem:[%s2694_s14 + $0x8] sm:$0xff] }
 0x502   : > { %v1363_v20 = vpack.c.bf16 %v1324_v19, %v1324_v19  ;;  %v2013_v19 = vld [vmem:[%s2694_s14] sm:$0xff] }
 0x504   : > { %v1368_v22 = vsel %vm819_vm1, %v1363_v20, 0  ;;  %v2022_v20 = vld [vmem:[%s2696_s16 + $0x38] sm:$0xff] }
 0x505   : > { %1377 = vmatpush.bf16.xpose.msra.mxu1 %v1368_v22 }
 0x507   : > { %v1325_v24 = vpop.f32.mrf.mxu3 }
 0x508   : > { %v2021_v24 = vld [vmem:[%s2696_s16 + $0x30] sm:$0xff] }
 0x566   : > { %v1203_v62 = vpop.xlane.xlu2 %1202 }
 0x567   : > { %v1204_v0 = vsub.f32 %v1198_v55, %v1203_v62 }
 0x569   : > { %v1205_v2 = vmul.f32 1.442695, %v1204_v0  ;;  %v1443_v0 = vunpack.c.l.bf16 %v2392_v5 }
 0x56b   : > { %2107 = vpow2.f32 %v1205_v2 }
 0x571   : > { %v2108_v6 = vpop.eup %2107 }
 0x572   : > { %v1207_v7 = vsel %vm819_vm1, %v2108_v6, 0.0 }
 0x573   : > { %1208 = vadd.xlane.f32.xlu2 %v1207_v7  ;;  %v2202_v7 = vmov 32.0  }
 0x5e6   : > { %v1209_v14 = vpop.xlane.xlu2 %1208 }
 0x5e7   : > { %2109 = vrcp.f32 %v1209_v14 }
 0x5ed   : > { %v2110_v15 = vpop.eup %2109 }
 0x5ee   : > { %v1211_v16 = vmul.f32 %v2110_v15, %v2108_v6 }
 0x5f0   : > { %v1212_v4 = vpack.c.bf16 %v1211_v16, %v1211_v16 }
 0x5f2   : > { %1895 = vmatmul.msk.bf16.vlgmr.msra.gmra.mxu0 %vm819_vm1, %v1212_v4 }
 0x5f3   : > { %1514 = vmatpush.bf16.msra.mxu0 %v2014_v18 }
 0x5f7   : > { %1515 = vmatpush.bf16.msra.mxu0 %v2013_v19 }
 0x602   : > { %1939 = vmatmul.msk.bf16.vlgmr.msrb.gmra.mxu0 %vm726_vm0, %v2423_v21 }
 0x66f   : > { %v1229_v27 = vpop.f32.mrf.mxu0 }
 0x670   : > { %v1233_v28 = vpack.c.bf16 %v1229_v27, %v1229_v27  ;;  %v2020_v27 = vld [vmem:[%s2696_s16 + $0x28] sm:$0xff] }
 0x672   : > { %1897 = vmatmul.msk.bf16.vlgmr.msrb.gmra.mxu1 %vm819_vm1, %v1233_v28  ;;  %v2019_v28 = vld [vmem:[%s2696_s16 + $0x20] sm:$0xff] }
 0x673   : > { %1591 = vmatpush.bf16.msrb.mxu1 %v2022_v20 }
 0x677   : > { %v1231_v31 = vpop.f32.mrf.mxu0  ;;  %1592 = vmatpush.bf16.msrb.mxu1 %v2021_v24 }
 0x678   : > { %v2018_v31 = vld [vmem:[%s2696_s16 + $0x18] sm:$0xff] }
 0x67b   : > { %1593 = vmatpush.bf16.msrb.mxu1 %v2020_v27 }
 0x67f   : > { %v1358_v45 = vpop.f32.mrf.mxu0  ;;  %1594 = vmatpush.bf16.msrb.mxu1 %v2019_v28 }
 0x680   : > { %v1359_v46 = vadd.f32 %v2091_v44, %v1358_v45  ;;  %v2016_v44 = vld [vmem:[%s2696_s16 + $0x8] sm:$0xff]  ;;  %v2015_v45 = vld [vmem:[%s2696_s16] sm:$0xff] }
 0x682   : > { %1940 = vmatmul.msk.bf16.vlgmr.msra.gmra.mxu1 %vm819_vm1, %v1362_v33  ;;  %v1395_v12 = vpack.c.bf16 %v1359_v46, %v1359_v46  ;;  %v2095_v46 = vld [vmem:[%s2695_s15] ss:$0 sm:$0xff] }
 0x683   : > { %1595 = vmatpush.bf16.msrb.mxu1 %v2018_v31 }
 0x684   : > { %v1400_v47 = vsel %vm855_vm3, %v1395_v12, 0 }
 0x685   : > { %1409 = vmatpush.bf16.msra.mxu2 %v1400_v47 }
 0x687   : > { %v1360_v48 = vpop.f32.mrf.mxu0  ;;  %1596 = vmatpush.bf16.msrb.mxu1 %v2017_v34 }
 0x68b   : > { %1597 = vmatpush.bf16.msrb.mxu1 %v2016_v44 }
 0x68f   : > { %1598 = vmatpush.bf16.msrb.mxu1 %v2015_v45 }
 0x6ef   : > { %v1251_v37 = vpop.f32.mrf.mxu1 }
 0x6f0   : > { %v1255_v38 = vadd.f32 %v1251_v37, %v1071_v36  ;;  %v2093_v37 = vld [vmem:[%s2692_s12] ss:$0 sm:$0xff] }
 0x6f7   : > { %v1253_v39 = vpop.f32.mrf.mxu1 }
 0x6f8   : > { %v2094_v39 = vld [vmem:[%s2693_s13] ss:$0 sm:$0xff] }
 0x6ff   : > { %v1379_v40 = vpop.f32.mrf.mxu1 }
 0x700   : > { %v1380_v41 = vadd.f32 %v1379_v40, %v2427_v26 }
 0x702   : > { %v1383_v42 = vsel %vm819_vm1, %v1380_v41, -inf }
 0x703   : > { %1384 = vmax.xlane.f32.xlu0 %v1383_v42 }
 0x707   : > { %v1381_v43 = vpop.f32.mrf.mxu1 }
 0x776   : > { %v1385_v21 = vpop.xlane.xlu0 %1384 }
 0x777   : > { %v1386_v49 = vsub.f32 %v1380_v41, %v1385_v21 }
 0x779   : > { %v1387_v50 = vmul.f32 1.442695, %v1386_v49 }
 0x77b   : > { %2111 = vpow2.f32 %v1387_v50  ;;  %v2096_v50 = vld [vmem:[%s2697_s17] ss:$0 sm:$0xff] }
 0x781   : > { %v2112_v26 = vpop.eup %2111 }
 0x782   : > { %v1389_v51 = vsel %vm819_vm1, %v2112_v26, 0.0 }
 0x783   : > { %1390 = vadd.xlane.f32.xlu1 %v1389_v51 }
 0x7f6   : > { %v1391_v54 = vpop.xlane.xlu1 %1390 }
 0x7f7   : > { %2113 = vrcp.f32 %v1391_v54 }
 0x7f8   : > { %2115 = vrcp.f32 %v2202_v7  ;;  %v2097_v7 = vld [vmem:[%s2740_s20] ss:$0 sm:$0xff]  ;;  %s2137_s20 = scalar_lea.hbm %s2136_s19, 4 }
 0x7f9   : > { %p2138_p12 = scmp.ne.s32.totalorder %s2136_s19, %s2137_s20  ;;  %p2143_p2 = scmp.lt.s32.totalorder %s2141_s3, %s2137_s20 }
 0x7fb   : > { %p2139_p13 = pnand %p2138_p12, %p2348_p4  ;;  %p2144_p3 = por %p2143_p2, %p2142_p1 }
 0x7fd   : > { %v2114_v55 = vpop.eup %2113  ;;  %p2140_p0 = pneg %p2139_p13 }
 0x7fe   : > { %v1393_v56 = vmul.f32 %v2114_v55, %v2112_v26  ;;  %v2116_v8 = vpop.eup %2115 }
 0x7ff   : > { %v1451_v9 = vmul.f32 32.0, %v2116_v8  ;;  %vm1455_vm4 = vweird.f32 %v2116_v8  ;;  %p2145_p5 = pnand %p2144_p3, %p2140_p0 }
 0x800   : > { %v1394_v57 = vpack.c.bf16 %v1393_v56, %v1393_v56 }
 0x801   : > { %v1452_v10 = vsub.f32 1.0, %v1451_v9 }
 0x802   : > { %1941 = vmatmul.msk.bf16.vlgmr.msra.gmra.mxu2 %vm819_vm1, %v1394_v57 }
 0x803   : > { %v1453_v11 = vmul.f32 %v2116_v8, %v1452_v10  ;;  %v2098_v10 = vld [vmem:[%s2741_s21] ss:$0 sm:$0xff] }
 0x805   : > { %v1454_v13 = vadd.f32 %v2116_v8, %v1453_v11 }
 0x807   : > { %v2585_v14 = vsel %vm1455_vm4, %v2116_v8, %v1454_v13 }
 0x885   : > { %v1411_v58 = vpop.f32.mrf.mxu2 }
 0x886   : > { %v1415_v59 = vpack.c.bf16 %v1411_v58, %v1411_v58 }
 0x888   : > { %1943 = vmatmul.msk.bf16.vlgmr.msrb.gmra.mxu3 %vm819_vm1, %v1415_v59 }
 0x88d   : > { %v1413_v60 = vpop.f32.mrf.mxu2 }
 0x90b   : > { %v1433_v62 = vpop.f32.mrf.mxu3 }
 0x90c   : > { %v1437_v63 = vadd.f32 %v1433_v62, %v1255_v38 }
 0x90e   : > { %v1442_v1 = vadd.f32 %v2092_v61, %v1437_v63 }
 0x910   : > { %v1444_v2 = vadd.f32 %v1443_v0, %v1442_v1 }
 0x912   : > { %v1447_v3 = vsel %vm726_vm0, %v1444_v2, 0.0 }
 0x913   : > { %1448 = vadd.xlane.f32.xlu2 %v1447_v3  ;;  %v1435_v6 = vpop.f32.mrf.mxu3 }
 0x986   : > { %v1449_v15 = vpop.xlane.xlu2 %1448 }
 0x987   : > { %v1457_v16 = vmul.f32 %v2585_v14, %v1449_v15 }
 0x989   : > { %v1458_v5 = vsub.f32 %v1444_v2, %v1457_v16 }
 0x98b   : > { %v1459_v4 = vmul.f32 %v1458_v5, %v1458_v5 }
 0x98d   : > { %v1460_v17 = vsel %vm726_vm0, %v1459_v4, 0.0 }
 0x98e   : > { %1461 = vadd.xlane.f32.xlu0 %v1460_v17 }
 0xa01   : > { %v1462_v22 = vpop.xlane.xlu0 %1461 }
 0xa02   : > { %v1463_v23 = vmul.f32 %v1462_v22, %v2585_v14 }
 0xa04   : > { %v1464_v25 = vadd.f32 1e-05, %v1463_v23 }
 0xa06   : > { %2117 = vrsqrt.f32 %v1464_v25  ;;  %vm1471_vm6 = vweird.f32 %v1464_v25 }
 0xa0c   : > { %v2118_v29 = vpop.eup %2117 }
 0xa0d   : > { %v1466_v30 = vmul.f32 %v2118_v29, %v1464_v25  ;;  %vm1472_vm5 = vweird.f32 %v2118_v29 }
 0xa0e   : > { %vm1473_vm7 = vmor %vm1471_vm6, %vm1472_vm5 }
 0xa0f   : > { %v1467_v32 = vmul.f32 %v2118_v29, %v1466_v30 }
 0xa11   : > { %v1468_v33 = vmul.f32 0.5, %v1467_v32 }
 0xa13   : > { %v1469_v35 = vsub.f32 1.5, %v1468_v33 }
 0xa15   : > { %v1470_v36 = vmul.f32 %v2118_v29, %v1469_v35 }
 0xa17   : > { %v1474_v38 = vsel %vm1473_vm7, %v2118_v29, %v1470_v36 }
 0xa18   : > { %v1475_v40 = vmul.f32 %v1474_v38, %v1458_v5 }
 0xa1a   : > { %v1479_v41 = vmul.f32 %v2093_v37, %v1475_v40 }
 0xa1c   : > { %v1483_v42 = vadd.f32 %v2094_v39, %v1479_v41 }
 0xa1e   : > { %v1484_v43 = vpack.c.bf16 %v1483_v42, %v1483_v42 }
 0xa20   : > { %1952 = vmatmul.msk.bf16.vlgmr.msra.gmra.mxu0 %vm726_vm0, %v1484_v43 }
 0xa9d   : > { %v1517_v12 = vpop.f32.mrf.mxu0 }
 0xa9e   : > { %v1518_v47 = vadd.f32 %v2095_v46, %v1517_v12 }
 0xaa0   : > { %v1521_v48 = vmax.f32 %v1518_v47, 0.0 }
 0xaa2   : > { %v1522_v21 = vpack.c.bf16 %v1521_v48, %v1521_v48 }
 0xaa4   : > { %1599 = vmatmul.bf16.vlgmr.msrb.gmra.mxu1 %v1522_v21 }
 0xaa5   : > { %v1519_v49 = vpop.f32.mrf.mxu0 }
 0xb21   : > { %v1600_v26 = vpop.f32.mrf.mxu1 }
 0xb22   : > { %v1601_v51 = vadd.f32 %v2096_v50, %v1600_v26 }
 0xb24   : > { %v1604_v52 = vadd.f32 %v1601_v51, %v1483_v42 }
 0xb26   : > { %v1607_v53 = vsel %vm726_vm0, %v1604_v52, 0.0 }
 0xb27   : > { %1608 = vadd.xlane.f32.xlu1 %v1607_v53 }
 0xb29   : > { %v1602_v54 = vpop.f32.mrf.mxu1 }
 0xb9a   : > { %v1609_v55 = vpop.xlane.xlu1 %1608 }
 0xb9b   : > { %v1610_v56 = vmul.f32 %v1609_v55, %v2585_v14 }
 0xb9d   : > { %v1611_v57 = vsub.f32 %v1604_v52, %v1610_v56 }
 0xb9f   : > { %v1612_v58 = vmul.f32 %v1611_v57, %v1611_v57 }
 0xba1   : > { %v1613_v59 = vsel %vm726_vm0, %v1612_v58, 0.0 }
 0xba2   : > { %1614 = vadd.xlane.f32.xlu2 %v1613_v59 }
 0xc15   : > { %v1615_v60 = vpop.xlane.xlu2 %1614 }
 0xc16   : > { %v1616_v61 = vmul.f32 %v1615_v60, %v2585_v14 }
 0xc18   : > { %v1617_v62 = vadd.f32 1e-05, %v1616_v61 }
 0xc1a   : > { %2119 = vrsqrt.f32 %v1617_v62  ;;  %vm1624_vm9 = vweird.f32 %v1617_v62 }
 0xc20   : > { %v2120_v63 = vpop.eup %2119 }
 0xc21   : > { %v1619_v0 = vmul.f32 %v2120_v63, %v1617_v62  ;;  %vm1625_vm8 = vweird.f32 %v2120_v63 }
 0xc22   : > { %vm1626_vm10 = vmor %vm1624_vm9, %vm1625_vm8 }
 0xc23   : > { %v1620_v1 = vmul.f32 %v2120_v63, %v1619_v0 }
 0xc25   : > { %v1621_v2 = vmul.f32 0.5, %v1620_v1 }
 0xc27   : > { %v1622_v3 = vsub.f32 1.5, %v1621_v2 }
 0xc29   : > { %v1623_v6 = vmul.f32 %v2120_v63, %v1622_v3 }
 0xc2b   : > { %v1627_v8 = vsel %vm1626_vm10, %v2120_v63, %v1623_v6 }
 0xc2c   : > { %v1628_v9 = vmul.f32 %v1627_v8, %v1611_v57 }
 0xc2e   : > { %v1632_v11 = vmul.f32 %v2097_v7, %v1628_v9 }
 0xc30   : > { %v1636_v13 = vadd.f32 %v2098_v10, %v1632_v11 }
 0xc32   : > { %v1637_v14 = vpack.c.bf16 %v1636_v13, %v1636_v13 }
 0xc34   : > { %1639 = vst.msk [vmem:[%s679_s29] sm:$0xf] %vm1638_vm11, %v1637_v14 }
 0xc35   : > { %2148 = shalt.err (!%p2145_p5)
}
 0xc36   : > { %2023 = dma.vmem_to_hbm [thread:$0]  (%p2348_p4), %s1655_s5, 64, %s1657_s23, %s1641_s18  }
 0xc37 PF: > { %s2744_s0 = sld [smem:[#allocation9_spill]] }
 0xc38   : > { %s2745_s25 = sld [smem:[#allocation5_spill]] }
 0xc3d   : > { %p2029_p6 = scmp.ge.s32.totalorder %s2744_s0, 2 }
 0xc3e   : > { %s1668_s26 = sand.u32 1, %s2745_s25  }
 0xc3f   : > { %p2026_p7 = pnand %p2029_p6, %p2355_p8  ;;  %s1669_s29 = scalar_lea.sflag [#allocation3], %s1668_s26 }
 0xc41   : > { %p2027_p9 = pneg %p2026_p7 }
 0xc43   : > { %2174 = dma.done.wait (%p2027_p9), %s1669_s29, 64  }
 0xc44   : > { %2176 = vsyncadd (%p2027_p9), %s1669_s29, 4294967232  ;;  %s33_s25 = sadd.s32 1, %s2744_s0   ;;  %s2747_s19 = sld [smem:[#allocation6_spill]] }
 0xc45   : > { %p30_p10 = scmp.ge.s32.totalorder %s33_s25, 4   ;;  %s2748_s23 = sld [smem:[#allocation13_spill]] }
 0xc46   : > { %s2749_s24 = sld [smem:[#allocation8_spill]]  ;;  %s2751_s1 = smov %s2183_s22 }
 0xc47   : > { %s2750_s2 = sld [smem:[#allocation10_spill]]  ;;  %32 = sbr.rel (!%p30_p10) target bundleno = 14 (0xe), region = 165 }
 0xc4a   : > { %s2752_s22 = smov %s2747_s19 }
 0xc4c   :  { %1675 = vsyncpa [#allocation3], 1 }
 0xc4d   :  { %1677 = vsyncpa [#allocation3 + $0x1], 1 }

</bundles_post_ra>
